<compile_context>
chip_gen: v5e
topology: v5e:2x2
jax: 0.10.0
libtpu: 0.0.40
codegen_flags: <defaults>
</compile_context>

<pallas_src>
import math

import jax
import jax.numpy as jnp
from jax.experimental import pallas as pl
from jax.experimental.pallas import tpu as pltpu

EPS = 1e-5  # GroupNorm default eps


def _make_self_attn_kernel(S, C, G, bt, compute_dtype):
    """Build the kernel specialized for (S, C, G, batch_block, compute dtype)."""
    cpg = C // G
    inv_n = 1.0 / float(cpg * S)      # static 1/(elements per group)
    use_gmat = cpg > 1
    pad = 8                           # sublane-aligned ones rows fused into attn@v
    unroll = bool(S <= 256)           # unroll only when the working set is small

    def _body(x_ref, wav_ref, wo_ref, bo_ref, gamma_ref, beta_ref,
              gmat_gc_ref, gmat_cg_ref, o_ref):
        wav = wav_ref[...]            # (2C, C)  [A = wq^T wk / sqrt(C) ; wv]
        wo = wo_ref[...]              # (C, C)
        bo = bo_ref[...]              # (C, 1) fp32
        gamma = gamma_ref[...]        # (C, 1) fp32
        beta = beta_ref[...]          # (C, 1) fp32
        if use_gmat:
            gmat_gc = gmat_gc_ref[...]   # (G, C) fp32
            gmat_cg = gmat_cg_ref[...]   # (C, G) fp32
        # Hoisted out of the batch loop (broadcasts are not CSE'd).
        ones_rows = jnp.ones((pad, S), compute_dtype)

        def step(b, carry):
            x = x_ref[b]              # (C, S) fp32, channel-major

            # ---- GroupNorm: two-pass centered variance (fp32) ----
            row_sum = jnp.sum(x, axis=1, keepdims=True)             # (C, 1)
            if use_gmat:
                mean_g = jnp.dot(gmat_gc, row_sum,
                                 preferred_element_type=jnp.float32) * inv_n
                mean_c = jnp.dot(gmat_cg, mean_g,
                                 preferred_element_type=jnp.float32)  # (C, 1)
            else:
                mean_c = row_sum * inv_n                             # cpg == 1
            xc = x - mean_c
            row_sq = jnp.sum(xc * xc, axis=1, keepdims=True)         # (C, 1)
            if use_gmat:
                var_g = jnp.dot(gmat_gc, row_sq,
                                preferred_element_type=jnp.float32) * inv_n
                var_c = jnp.dot(gmat_cg, var_g,
                                preferred_element_type=jnp.float32)   # (C, 1)
            else:
                var_c = row_sq * inv_n
            inv_std = jax.lax.rsqrt(var_c + EPS)
            xn = xc * (inv_std * gamma) + beta                       # (C, S) fp32
            xn_b = xn.astype(compute_dtype)

            # ---- stacked weight matmul: [A@xn ; wv@xn] in one MXU pass ----
            akv = jnp.dot(wav, xn_b,
                          preferred_element_type=jnp.float32)        # (2C, S)
            ak_b = akv[:C].astype(compute_dtype)                     # (C, S)
            v_b = akv[C:].astype(compute_dtype)                      # (C, S)

            # ---- scores = xn^T (A xn): single low-precision transpose ----
            xn_t = xn_b.T                                            # (S, C)
            scores = jnp.dot(xn_t, ak_b,
                             preferred_element_type=jnp.float32)     # (S, S) fp32

            # ---- un-normalized softmax numerator (fp32 max/exp, v5e-safe) ----
            p = jnp.exp(scores - jnp.max(scores, axis=-1, keepdims=True))
            p_b = p.astype(compute_dtype)

            # ---- attn@v with the denominator fused in via ones rows (MXU) ----
            v_ext = jnp.concatenate([v_b, ones_rows], axis=0)        # (C+pad, S)
            out_ext = jax.lax.dot_general(
                v_ext, p_b, dimension_numbers=(((1,), (1,)), ((), ())),
                preferred_element_type=jnp.float32)                  # (C+pad, S)
            denom = out_ext[C:C + 1, :]                              # (1, S), >= 1
            out_cs = out_ext[:C, :] * (1.0 / denom)                  # exact, O(C*S)

            # ---- 1x1 out conv (+ bias) and residual ----
            y = jnp.dot(wo, out_cs.astype(compute_dtype),
                        preferred_element_type=jnp.float32) + bo + x
            o_ref[b] = y
            return carry

        jax.lax.fori_loop(0, bt, step, 0, unroll=unroll)

    if use_gmat:
        def kernel(x_ref, wav_ref, wo_ref, bo_ref, gamma_ref, beta_ref,
                   gmat_gc_ref, gmat_cg_ref, o_ref):
            _body(x_ref, wav_ref, wo_ref, bo_ref, gamma_ref, beta_ref,
                  gmat_gc_ref, gmat_cg_ref, o_ref)
    else:
        def kernel(x_ref, wav_ref, wo_ref, bo_ref, gamma_ref, beta_ref, o_ref):
            _body(x_ref, wav_ref, wo_ref, bo_ref, gamma_ref, beta_ref,
                  None, None, o_ref)

    return kernel


def _vmem_budget():
    """Generation-aware VMEM budget (bytes), with headroom for Mosaic scratch."""
    cap = 128 * 1024 * 1024
    try:
        cap = int(pltpu.get_tpu_info().vmem_capacity_bytes)
    except Exception:
        pass
    return int(0.75 * cap)   # ~48 MiB on v7x, ~96 MiB on v5e/v6e


def _pick_batch_block(B, S, C, vmem_budget):
    """Fuse batch elements per grid step; keep >= 2 grid steps (megacore/v7x)."""
    if B <= 2:
        return 1
    io_per_b = 4 * 4 * C * S                   # (in+out) fp32 x double-buffer
    live_one_b = 4 * (12 * C * S + 3 * S * S)  # per-batch intermediates (loop-bounded)
    cap = vmem_budget // 2
    bt = 1
    while (B % (2 * bt) == 0 and B // (2 * bt) >= 2
           and 2 * bt * io_per_b + live_one_b <= cap):
        bt *= 2
    return bt


def self_attention_pallas(x_nchw, w_qkv, w_out, b_out, gamma, beta, norm_groups,
                          n_head=1, batch_block=None):
    """x_nchw: (B, C, H, W); w_qkv: (3C, C); w_out: (C, C); b_out/gamma/beta: (C,)."""
    B, C, H, W = x_nchw.shape
    assert n_head == 1, "multi-head (n_head > 1) path not implemented"
    S = H * W
    G = norm_groups
    assert C % G == 0
    cpg = C // G

    # bf16 MXU operands only on TPU; fp32 elsewhere (interpret / CPU fallback).
    compute_dtype = jnp.bfloat16 if jax.default_backend() == "tpu" else jnp.float32

    # NCHW -> (B, C, S): a pure reshape, no HBM transpose.
    x = jnp.asarray(x_nchw, jnp.float32).reshape(B, C, S)

    # Weight prep (host side, fp32): fold the 1/sqrt(C) score scale into
    # A = w_q^T w_k / sqrt(C), stack [A ; w_v] so the kernel does one matmul.
    w_qkv = jnp.asarray(w_qkv, jnp.float32)
    w_q = w_qkv[:C]
    w_k = w_qkv[C:2 * C]
    w_v = w_qkv[2 * C:]
    a_mat = jnp.dot(w_q.T, w_k, precision=jax.lax.Precision.HIGHEST) / math.sqrt(C)
    w_av = jnp.concatenate([a_mat, w_v], axis=0).astype(compute_dtype)   # (2C, C)
    w_o = jnp.asarray(w_out, jnp.float32).astype(compute_dtype)          # (C, C)
    b_o = jnp.asarray(b_out, jnp.float32).reshape(C, 1)
    gamma_r = jnp.asarray(gamma, jnp.float32).reshape(C, 1)
    beta_r = jnp.asarray(beta, jnp.float32).reshape(C, 1)

    vmem_budget = _vmem_budget()
    bt = batch_block if batch_block is not None else _pick_batch_block(B, S, C, vmem_budget)
    assert B % bt == 0
    grid = (B // bt,)

    in_specs = [
        pl.BlockSpec((bt, C, S), lambda i: (i, 0, 0)),
        pl.BlockSpec((2 * C, C), lambda i: (0, 0)),
        pl.BlockSpec((C, C), lambda i: (0, 0)),
        pl.BlockSpec((C, 1), lambda i: (0, 0)),
        pl.BlockSpec((C, 1), lambda i: (0, 0)),
        pl.BlockSpec((C, 1), lambda i: (0, 0)),
    ]
    args = [x, w_av, w_o, b_o, gamma_r, beta_r]

    if cpg > 1:
        ch_group = (jnp.arange(C) // cpg).astype(jnp.int32)
        gmat_cg = (ch_group[:, None] == jnp.arange(G)[None, :]).astype(jnp.float32)
        gmat_gc = gmat_cg.T
        in_specs += [pl.BlockSpec((G, C), lambda i: (0, 0)),
                     pl.BlockSpec((C, G), lambda i: (0, 0))]
        args += [gmat_gc, gmat_cg]

    # Generous per-step VMEM estimate (fori_loop bounds intermediates to 1 batch).
    vmem_est = (4 * 4 * bt * C * S
                + 4 * (12 * C * S + 3 * S * S)
                + 4 * 2 * (3 * C * C + 2 * C * G + 8 * C))
    vmem_limit = int(min(max(2 * vmem_est, 16 * 1024 * 1024), vmem_budget))

    kernel = _make_self_attn_kernel(S, C, G, bt, compute_dtype)

    out = pl.pallas_call(
        kernel,
        out_shape=jax.ShapeDtypeStruct((B, C, S), jnp.float32),
        grid_spec=pltpu.PrefetchScalarGridSpec(
            num_scalar_prefetch=0,
            grid=grid,
            in_specs=in_specs,
            out_specs=pl.BlockSpec((bt, C, S), lambda i: (i, 0, 0)),
        ),
        compiler_params=pltpu.CompilerParams(
            dimension_semantics=("parallel",),
            vmem_limit_bytes=vmem_limit,
        ),
    )(*args)

    # (B, C, S) -> NCHW: pure reshape, no transpose.
    return out.reshape(B, C, H, W)


def self_attention_reference(x, w_qkv, w_out, b_out, gamma, beta, norm_groups):
    """Pure-JAX replica of the PyTorch forward (NCHW, n_head=1), for verification."""
    B, C, H, W = x.shape
    G = norm_groups
    cpg = C // G
    xg = x.reshape(B, G, cpg, H, W)
    mean = xg.mean(axis=(2, 3, 4), keepdims=True)
    var = xg.var(axis=(2, 3, 4), keepdims=True)
    xn = (xg - mean) / jnp.sqrt(var + EPS)
    xn = xn.reshape(B, C, H, W) * gamma[None, :, None, None] + beta[None, :, None, None]
    qkv = jnp.einsum('oc,bchw->bohw', w_qkv, xn)
    q, k, v = jnp.split(qkv, 3, axis=1)
    attn = jnp.einsum('bchw,bcyx->bhwyx', q, k) / math.sqrt(C)
    attn = attn.reshape(B, H, W, H * W)
    attn = jax.nn.softmax(attn, axis=-1).reshape(B, H, W, H, W)
    out = jnp.einsum('bhwyx,bcyx->bchw', attn, v)
    out = jnp.einsum('oc,bchw->bohw', w_out, out) + b_out[None, :, None, None]
    return out + x


if __name__ == "__main__":
    # Config consistent with the module defaults: in_channel=32 (norm_groups=32
    # must divide it), n_head=1.  H=W=16 -> S=256: lane-dense output blocks.
    B, C, H, W = 2, 32, 16, 16
    NORM_GROUPS = 32

    key = jax.random.PRNGKey(0)
    kx, kq, ko, kb, kg, kbt = jax.random.split(key, 6)
    x = jax.random.normal(kx, (B, C, H, W), jnp.float32)
    w_qkv = 0.1 * jax.random.normal(kq, (3 * C, C), jnp.float32)   # Conv2d(C, 3C, 1, bias=False)
    w_out = 0.1 * jax.random.normal(ko, (C, C), jnp.float32)       # Conv2d(C, C, 1)
    b_out = 0.1 * jax.random.normal(kb, (C,), jnp.float32)
    gamma = 1.0 + 0.1 * jax.random.normal(kg, (C,), jnp.float32)   # GroupNorm weight
    beta = 0.1 * jax.random.normal(kbt, (C,), jnp.float32)         # GroupNorm bias

    y = self_attention_pallas(x, w_qkv, w_out, b_out, gamma, beta, NORM_GROUPS)
    y = jax.block_until_ready(y)

    y_ref = self_attention_reference(x, w_qkv, w_out, b_out, gamma, beta, NORM_GROUPS)
    assert y.shape == (B, C, H, W)
    max_err = float(jnp.max(jnp.abs(y - y_ref)))
    # bf16 MXU operands (fp32 accumulation) on TPU -> relaxed tolerance.
    assert jnp.allclose(y, y_ref, atol=3e-2, rtol=3e-2), \
        f"mismatch vs pure-JAX reference (max abs err {max_err})"

    print("KERNEL_OK")
</pallas_src>

<mosaic_0001>
module attributes {stable_mosaic.version = 11 : i64} {
  func.func @kernel(%arg0: i32, %arg1: memref<1x32x256xf32, #tpu.memory_space<vmem>>, %arg2: memref<64x32xf32, #tpu.memory_space<vmem>>, %arg3: memref<32x32xf32, #tpu.memory_space<vmem>>, %arg4: memref<32x1xf32, #tpu.memory_space<vmem>>, %arg5: memref<32x1xf32, #tpu.memory_space<vmem>>, %arg6: memref<32x1xf32, #tpu.memory_space<vmem>>, %arg7: memref<1x32x256xf32, #tpu.memory_space<vmem>>) attributes {dimension_semantics = [#tpu.dimension_semantics<parallel>], iteration_bounds = array<i64: 2>, scalar_prefetch = 0 : i64, scratch_operands = 0 : i64, tpu.core_type = #tpu.core_type<tc>, window_params = [{transform_indices = @transform_0, window_bounds = array<i64: 1, 32, 256>}, {pipeline_mode = #tpu.pipeline_mode<synchronous>, transform_indices = @transform_1, window_bounds = array<i64: 64, 32>}, {pipeline_mode = #tpu.pipeline_mode<synchronous>, transform_indices = @transform_2, window_bounds = array<i64: 32, 32>}, {pipeline_mode = #tpu.pipeline_mode<synchronous>, transform_indices = @transform_3, window_bounds = array<i64: 32, 1>}, {pipeline_mode = #tpu.pipeline_mode<synchronous>, transform_indices = @transform_4, window_bounds = array<i64: 32, 1>}, {pipeline_mode = #tpu.pipeline_mode<synchronous>, transform_indices = @transform_5, window_bounds = array<i64: 32, 1>}, {transform_indices = @transform_6, window_bounds = array<i64: 1, 32, 256>}]} {
    %c0 = arith.constant 0 : index
    %c0_0 = arith.constant 0 : index
    %0 = vector.load %arg2[%c0, %c0_0] : memref<64x32xf32, #tpu.memory_space<vmem>>, vector<64x32xf32>
    %c0_1 = arith.constant 0 : index
    %c0_2 = arith.constant 0 : index
    %1 = vector.load %arg3[%c0_1, %c0_2] : memref<32x32xf32, #tpu.memory_space<vmem>>, vector<32x32xf32>
    %c0_3 = arith.constant 0 : index
    %c0_4 = arith.constant 0 : index
    %2 = vector.load %arg4[%c0_3, %c0_4] : memref<32x1xf32, #tpu.memory_space<vmem>>, vector<32x1xf32>
    %c0_5 = arith.constant 0 : index
    %c0_6 = arith.constant 0 : index
    %3 = vector.load %arg5[%c0_5, %c0_6] : memref<32x1xf32, #tpu.memory_space<vmem>>, vector<32x1xf32>
    %c0_7 = arith.constant 0 : index
    %c0_8 = arith.constant 0 : index
    %4 = vector.load %arg6[%c0_7, %c0_8] : memref<32x1xf32, #tpu.memory_space<vmem>>, vector<32x1xf32>
    %cst = arith.constant 1.000000e+00 : f32
    %5 = vector.broadcast %cst : f32 to vector<8x256xf32>
    %c0_i32 = arith.constant 0 : i32
    %6 = arith.index_cast %c0_i32 : i32 to index
    %c0_9 = arith.constant 0 : index
    %c0_10 = arith.constant 0 : index
    %7 = vector.load %arg1[%6, %c0_9, %c0_10] : memref<1x32x256xf32, #tpu.memory_space<vmem>>, vector<1x32x256xf32>
    %8 = vector.shape_cast %7 : vector<1x32x256xf32> to vector<32x256xf32>
    %cst_11 = arith.constant dense<0.000000e+00> : vector<32xf32>
    %9 = vector.multi_reduction <add>, %8, %cst_11 [1] : vector<32x256xf32> to vector<32xf32>
    %10 = vector.shape_cast %9 : vector<32xf32> to vector<32x1xf32>
    %cst_12 = arith.constant 3.906250e-03 : f32
    %11 = vector.broadcast %cst_12 : f32 to vector<32x1xf32>
    %12 = arith.mulf %10, %11 : vector<32x1xf32>
    %13 = vector.broadcast %12 : vector<32x1xf32> to vector<32x256xf32>
    %14 = arith.subf %8, %13 : vector<32x256xf32>
    %15 = arith.mulf %14, %14 : vector<32x256xf32>
    %cst_13 = arith.constant dense<0.000000e+00> : vector<32xf32>
    %16 = vector.multi_reduction <add>, %15, %cst_13 [1] : vector<32x256xf32> to vector<32xf32>
    %17 = vector.shape_cast %16 : vector<32xf32> to vector<32x1xf32>
    %cst_14 = arith.constant 3.906250e-03 : f32
    %18 = vector.broadcast %cst_14 : f32 to vector<32x1xf32>
    %19 = arith.mulf %17, %18 : vector<32x1xf32>
    %cst_15 = arith.constant 9.99999974E-6 : f32
    %20 = vector.broadcast %cst_15 : f32 to vector<32x1xf32>
    %21 = arith.addf %19, %20 : vector<32x1xf32>
    %22 = math.rsqrt %21 : vector<32x1xf32>
    %23 = arith.mulf %22, %3 : vector<32x1xf32>
    %24 = vector.broadcast %23 : vector<32x1xf32> to vector<32x256xf32>
    %25 = arith.mulf %14, %24 : vector<32x256xf32>
    %26 = vector.broadcast %4 : vector<32x1xf32> to vector<32x256xf32>
    %27 = arith.addf %25, %26 : vector<32x256xf32>
    %cst_16 = arith.constant dense<0.000000e+00> : vector<64x256xf32>
    %28 = tpu.matmul %0, %27, %cst_16 {dimension_numbers = #tpu.dot_dimension_numbers<[1], [0], [0], [1], [0, 0, 1, 1], [], []>} : vector<64x32xf32>, vector<32x256xf32>, vector<64x256xf32> -> vector<64x256xf32>
    %29 = vector.extract_strided_slice %28 {offsets = [0, 0], sizes = [32, 256], strides = [1, 1]} : vector<64x256xf32> to vector<32x256xf32>
    %30 = vector.extract_strided_slice %28 {offsets = [32, 0], sizes = [32, 256], strides = [1, 1]} : vector<64x256xf32> to vector<32x256xf32>
    %31 = tpu.transpose %27, [1, 0] : vector<32x256xf32> -> vector<256x32xf32>
    %cst_17 = arith.constant dense<0.000000e+00> : vector<256x256xf32>
    %32 = tpu.matmul %31, %29, %cst_17 {dimension_numbers = #tpu.dot_dimension_numbers<[1], [0], [0], [1], [0, 0, 1, 1], [], []>} : vector<256x32xf32>, vector<32x256xf32>, vector<256x256xf32> -> vector<256x256xf32>
    %cst_18 = arith.constant dense<0xFF800000> : vector<256xf32>
    %33 = vector.multi_reduction <maximumf>, %32, %cst_18 [1] : vector<256x256xf32> to vector<256xf32>
    %34 = vector.shape_cast %33 : vector<256xf32> to vector<256x1xf32>
    %35 = vector.broadcast %34 : vector<256x1xf32> to vector<256x256xf32>
    %36 = arith.subf %32, %35 : vector<256x256xf32>
    %37 = math.exp %36 : vector<256x256xf32>
    %38 = tpu.concatenate %30, %5 in 0 : vector<32x256xf32>, vector<8x256xf32> -> vector<40x256xf32>
    %cst_19 = arith.constant dense<0.000000e+00> : vector<40x256xf32>
    %39 = tpu.matmul %38, %37, %cst_19 {dimension_numbers = #tpu.dot_dimension_numbers<[1], [1], [0], [0], [0, 0, 1, 0], [], []>} : vector<40x256xf32>, vector<256x256xf32>, vector<40x256xf32> -> vector<40x256xf32>
    %40 = vector.extract_strided_slice %39 {offsets = [32, 0], sizes = [1, 256], strides = [1, 1]} : vector<40x256xf32> to vector<1x256xf32>
    %41 = vector.extract_strided_slice %39 {offsets = [0, 0], sizes = [32, 256], strides = [1, 1]} : vector<40x256xf32> to vector<32x256xf32>
    %cst_20 = arith.constant 1.000000e+00 : f32
    %42 = vector.broadcast %cst_20 : f32 to vector<1x256xf32>
    %43 = arith.divf %42, %40 : vector<1x256xf32>
    %44 = vector.broadcast %43 : vector<1x256xf32> to vector<32x256xf32>
    %45 = arith.mulf %41, %44 : vector<32x256xf32>
    %cst_21 = arith.constant dense<0.000000e+00> : vector<32x256xf32>
    %46 = tpu.matmul %1, %45, %cst_21 {dimension_numbers = #tpu.dot_dimension_numbers<[1], [0], [0], [1], [0, 0, 1, 1], [], []>} : vector<32x32xf32>, vector<32x256xf32>, vector<32x256xf32> -> vector<32x256xf32>
    %47 = vector.broadcast %2 : vector<32x1xf32> to vector<32x256xf32>
    %48 = arith.addf %46, %47 : vector<32x256xf32>
    %49 = arith.addf %48, %8 : vector<32x256xf32>
    %50 = arith.index_cast %c0_i32 : i32 to index
    %c0_22 = arith.constant 0 : index
    %c0_23 = arith.constant 0 : index
    %51 = vector.load %arg7[%50, %c0_22, %c0_23] : memref<1x32x256xf32, #tpu.memory_space<vmem>>, vector<1x32x256xf32>
    %52 = vector.shape_cast %51 : vector<1x32x256xf32> to vector<32x256xf32>
    %53 = vector.shape_cast %49 : vector<32x256xf32> to vector<1x32x256xf32>
    tpu.vector_store %arg7[%50, %c0_22, %c0_23], %53 {strides = array<i32>} : memref<1x32x256xf32, #tpu.memory_space<vmem>>, vector<1x32x256xf32>,
    %c1_i32 = arith.constant 1 : i32
    return
  }
  func.func @transform_0(%arg0: i32) -> (i32, i32, i32) {
    %c0_i32 = arith.constant 0 : i32
    %c0_i32_0 = arith.constant 0 : i32
    %c0_i32_1 = arith.constant 0 : i32
    return %arg0, %c0_i32, %c0_i32_0 : i32, i32, i32
  }
  func.func @transform_1(%arg0: i32) -> (i32, i32) {
    %c0_i32 = arith.constant 0 : i32
    %c0_i32_0 = arith.constant 0 : i32
    %c0_i32_1 = arith.constant 0 : i32
    return %c0_i32, %c0_i32_0 : i32, i32
  }
  func.func @transform_2(%arg0: i32) -> (i32, i32) {
    %c0_i32 = arith.constant 0 : i32
    %c0_i32_0 = arith.constant 0 : i32
    %c0_i32_1 = arith.constant 0 : i32
    return %c0_i32, %c0_i32_0 : i32, i32
  }
  func.func @transform_3(%arg0: i32) -> (i32, i32) {
    %c0_i32 = arith.constant 0 : i32
    %c0_i32_0 = arith.constant 0 : i32
    %c0_i32_1 = arith.constant 0 : i32
    return %c0_i32, %c0_i32_0 : i32, i32
  }
  func.func @transform_4(%arg0: i32) -> (i32, i32) {
    %c0_i32 = arith.constant 0 : i32
    %c0_i32_0 = arith.constant 0 : i32
    %c0_i32_1 = arith.constant 0 : i32
    return %c0_i32, %c0_i32_0 : i32, i32
  }
  func.func @transform_5(%arg0: i32) -> (i32, i32) {
    %c0_i32 = arith.constant 0 : i32
    %c0_i32_0 = arith.constant 0 : i32
    %c0_i32_1 = arith.constant 0 : i32
    return %c0_i32, %c0_i32_0 : i32, i32
  }
  func.func @transform_6(%arg0: i32) -> (i32, i32, i32) {
    %c0_i32 = arith.constant 0 : i32
    %c0_i32_0 = arith.constant 0 : i32
    %c0_i32_1 = arith.constant 0 : i32
    return %arg0, %c0_i32, %c0_i32_0 : i32, i32, i32
  }
}

</mosaic_0001>

<bundles_post_ra>
// kernel: tpu_custom_call.1
= control target key start
LH: loop header
LB: loop body
LE: loop exit
PB: predicated region body
PF: predicated region fallthrough
CT: control target
= control target key end

     0   :  { %11 = vsyncpa [#allocation3], 0  ;;  %s2653_s0 = inlined_call_operand.vmem [shape: f32[2,32,256], index: 0, kind: input, shape index: {}]   ;;  %s2654_s1 = inlined_call_operand.vmem [shape: f32[64,32], index: 1, kind: input, shape index: {}]   ;;  %s2655_s2 = inlined_call_operand.vmem [shape: f32[32,32], index: 2, kind: input, shape index: {}]   ;;  %s2656_s3 = inlined_call_operand.vmem [shape: f32[32,1], index: 3, kind: input, shape index: {}]   ;;  %s2657_s4 = inlined_call_operand.vmem [shape: f32[32,1], index: 4, kind: input, shape index: {}]   ;;  %s2658_s5 = inlined_call_operand.vmem [shape: f32[32,1], index: 5, kind: input, shape index: {}]   ;;  %s2659_s6 = inlined_call_operand.hbm [shape: f32[2,32,256], index: 6, kind: output, shape index: {}]  }
   0x1   :  { %13 = vsyncpa [#allocation3 + $0x1], 0  ;;  %s1967_s21 = smov 0   ;;  %s1969_s22 = smov 0  }
   0x2   :  { %s1971_s23 = smov 0   ;;  %s1973_s24 = smov 0  }
   0x3 LB: > { %s1988_s25 = sadd.s32 4294967295, %s1926_s24   ;;  %s1567_s26 = sadd.s32 4294967294, %s1926_s24   ;;  %s1926_s24 = sphi %s1973_s24, %s2740_s24   ;;  %s1922_s23 = sphi %s1971_s23, %s2739_s23   ;;  %s1918_s22 = sphi %s1969_s22, %s2738_s22   ;;  %s1914_s21 = sphi %s1967_s21, %s2737_s21  }
   0x4   : > { %s1992_s27 = sadd.s32 1, %s1926_s24   ;;  %s157_s28 = sadd.s32 1, %s1922_s23 }
   0x5   : > { %s154_s29 = ssub.s32 %s1926_s24, %s1992_s27  ;;  %p167_p0 = scmp.ne.s32.totalorder %s1922_s23, %s1918_s22 }
   0x6   : > { %p155_p1 = scmp.eq.s32.totalorder %s154_s29, 0  ;;  %p168_p2 = scmp.eq.s32.totalorder %s1988_s25, 1 }
   0x7   : > { %p173_p3 = scmp.ne.s32.totalorder %s1918_s22, %s1914_s21  ;;  %p174_p4 = scmp.eq.s32.totalorder %s1567_s26, 1 }
   0x8   : > { %s2003_s30 = scalar_select %p155_p1, %s1922_s23, %s157_s28  }
   0x9   : > { %p2005_p5 = por %p168_p2, %p167_p0  ;;  %p2009_p6 = por %p174_p4, %p173_p3 }
   0xa   : > { %p1570_p7 = scmp.ge.s32.totalorder %s1926_s24, 1  ;;  %p215_p8 = scmp.lt.s32.totalorder %s1926_s24, 3 }
   0xc   : > { %p216_p9 = pnand %p1570_p7, %p215_p8 }
   0xe   : > { %219 = sbr.rel (%p216_p9) target bundleno = 1519 (0x5ef), region = 44 }
  0x13   : > { %p245_p10 = scmp.lt.s32.totalorder %s1988_s25, 1  ;;  %v1928_v40 = vmov 0   ;;  %v273_v41 = vld [vmem:[%s2658_s5 + $0x18] sm:$0xff]  ;;  %vm434_vm12 = vcmask 261120   ;;  %s242_s20 = sand.u32 1, %s1918_s22  }
  0x14   : > { %1715 = vset.pattern.permute.xlu1 %v1928_v40  ;;  %1713 = vset.pattern.permute.xlu2 %v1928_v40  ;;  %s1571_s26 = sshll.u32 %s242_s20, 6  ;;  %s1668_s29 = sshll.u32 %s1988_s25, 6 }
  0x15   : > { %s246_s9 = scalar_select %p245_p10, %s1988_s25, 1  ;;  %1714 = vset.pattern.permute.xlu0 %v1928_v40 }
  0x16   : > { %s2602_s28 = scalar_lea.vmem [#allocation2], %s1571_s26  ;;  %s1501_s11 = scalar_lea.hbm %s2659_s6, %s1668_s29 }
  0x17   : > { %s1667_s10 = sshll.u32 %s246_s9, 6  ;;  %s1502_s12 = sshll.u32 %s2602_s28, 4  ;;  %s1503_s12 = int_to_ptr.vmem [resolvable:$true] %s1502_s12 }
  0x18   : > { %s2020_s13 = scalar_lea.vmem %s2653_s0, %s1667_s10  ;;  %s1504_s14 = sshll.u32 %s1501_s11, 4  ;;  %s1505_s14 = int_to_ptr.hbm [resolvable:$true] %s1504_s14 }
  0x19   : > { %v280_v0 = vld [vmem:[%s2020_s13 + $0x30] sm:$0xff]  ;;  %v281_v1 = vld [vmem:[%s2020_s13 + $0x38] sm:$0xff]  ;;  %v278_v6 = vld [vmem:[%s2020_s13 + $0x20] sm:$0xff]  ;;  %s1490_s15 = scalar_lea.sflag [#allocation3], %s242_s20  ;;  %s1878_s25 = sshra.s32 %s1505_s14, 4  ;;  %s1879_s25 = int_to_ptr.hbm [resolvable:$true] %s1878_s25 }
  0x1a   : > { %v276_v2 = vld [vmem:[%s2020_s13 + $0x10] sm:$0xff]  ;;  %v291_v3 = vadd.f32 %v281_v1, %v280_v0  ;;  %v277_v4 = vld [vmem:[%s2020_s13 + $0x18] sm:$0xff]  ;;  %v279_v7 = vld [vmem:[%s2020_s13 + $0x28] sm:$0xff]  ;;  %s1880_s16 = scalar_lea.hbm %s1879_s25, 64  ;;  %s1884_s19 = scalar_lea.hbm %s2659_s6, 128 }
  0x1b   : > { %v285_v5 = vadd.f32 %v277_v4, %v276_v2  ;;  %v274_v8 = vld [vmem:[%s2020_s13] sm:$0xff]  ;;  %v275_v9 = vld [vmem:[%s2020_s13 + $0x8] sm:$0xff]  ;;  %v288_v10 = vadd.f32 %v279_v7, %v278_v6  ;;  %p1881_p11 = scmp.ne.s32.totalorder %s1879_s25, %s1880_s16  ;;  %p1885_p0 = scmp.lt.s32.totalorder %s1879_s25, %s2659_s6 }
  0x1c   : > { %292 = vadd.xlane.f32.xlu0 %v291_v3  ;;  %v282_v11 = vadd.f32 %v275_v9, %v274_v8  ;;  %p1886_p1 = scmp.lt.s32.totalorder %s1884_s19, %s1880_s16 }
  0x1d   : > { %286 = vadd.xlane.f32.xlu1 %v285_v5  ;;  %p1882_p12 = pnand %p1881_p11, %p2005_p5 }
  0x1e   : > { %p1887_p2 = por %p1886_p1, %p1885_p0 }
  0x1f   : > { %p1883_p13 = pneg %p1882_p12 }
  0x21   : > { %p1888_p3 = pnand %p1887_p2, %p1883_p13 }
  0x24   : > { %289 = vadd.xlane.f32.xlu0 %v288_v10 }
  0x25   : > { %283 = vadd.xlane.f32.xlu1 %v282_v11 }
  0x8f   : > { %v293_v12 = vpop.xlane.xlu0 %292 }
  0x90   : > { %v297_v13 = vmul.f32 0.00390625, %v293_v12  ;;  %v287_v14 = vpop.xlane.xlu1 %286 }
  0x91   : > { %v295_v15 = vmul.f32 0.00390625, %v287_v14  ;;  %v268_v14 = vld [vmem:[%s2657_s4 + $0x10] sm:$0xff] }
  0x92   : > { %v2030_v16 = vsub.f32 %v280_v0, %v297_v13  ;;  %v2032_v17 = vsub.f32 %v281_v1, %v297_v13  ;;  %v269_v1 = vld [vmem:[%s2657_s4 + $0x18] sm:$0xff] }
  0x93   : > { %v2034_v18 = vsub.f32 %v276_v2, %v295_v15  ;;  %v2036_v19 = vsub.f32 %v277_v4, %v295_v15 }
  0x94   : > { %v312_v20 = vmul.f32 %v2030_v16, %v2030_v16  ;;  %v313_v21 = vmul.f32 %v2032_v17, %v2032_v17 }
  0x95   : > { %v308_v22 = vmul.f32 %v2034_v18, %v2034_v18  ;;  %v309_v23 = vmul.f32 %v2036_v19, %v2036_v19 }
  0x96   : > { %v323_v24 = vadd.f32 %v313_v21, %v312_v20  ;;  %v266_v20 = vld [vmem:[%s2657_s4] sm:$0xff] }
  0x97   : > { %v290_v25 = vpop.xlane.xlu0 %289  ;;  %v317_v26 = vadd.f32 %v309_v23, %v308_v22  ;;  %v272_v22 = vld [vmem:[%s2658_s5 + $0x10] sm:$0xff] }
  0x98   : > { %v296_v27 = vmul.f32 0.00390625, %v290_v25  ;;  %v284_v28 = vpop.xlane.xlu1 %283  ;;  %324 = vadd.xlane.f32.xlu2 %v323_v24 }
  0x99   : > { %v294_v29 = vmul.f32 0.00390625, %v284_v28  ;;  %318 = vadd.xlane.f32.xlu0 %v317_v26  ;;  %v267_v28 = vld [vmem:[%s2657_s4 + $0x8] sm:$0xff] }
  0x9a   : > { %v2046_v30 = vsub.f32 %v278_v6, %v296_v27  ;;  %v2048_v31 = vsub.f32 %v279_v7, %v296_v27 }
  0x9b   : > { %v2050_v32 = vsub.f32 %v274_v8, %v294_v29  ;;  %v2052_v33 = vsub.f32 %v275_v9, %v294_v29 }
  0x9c   : > { %v310_v34 = vmul.f32 %v2046_v30, %v2046_v30  ;;  %v311_v35 = vmul.f32 %v2048_v31, %v2048_v31 }
  0x9d   : > { %v306_v36 = vmul.f32 %v2050_v32, %v2050_v32  ;;  %v307_v37 = vmul.f32 %v2052_v33, %v2052_v33 }
  0x9e   : > { %v320_v38 = vadd.f32 %v311_v35, %v310_v34  ;;  %v270_v35 = vld [vmem:[%s2658_s5] sm:$0xff] }
  0x9f   : > { %v314_v39 = vadd.f32 %v307_v37, %v306_v36  ;;  %v271_v36 = vld [vmem:[%s2658_s5 + $0x8] sm:$0xff] }
  0xa0   : > { %321 = vadd.xlane.f32.xlu2 %v320_v38 }
  0xa1   : > { %315 = vadd.xlane.f32.xlu1 %v314_v39 }
  0xba   : > { %423 = vperm.xlu1 %1715, %v273_v41  }
 0x10b   : > { %v325_v42 = vpop.xlane.xlu2 %324 }
 0x10c   : > { %v329_v43 = vmul.f32 0.00390625, %v325_v42  ;;  %v319_v44 = vpop.xlane.xlu0 %318 }
 0x10d   : > { %v327_v45 = vmul.f32 0.00390625, %v319_v44 }
 0x10e   : > { %v333_v46 = vadd.f32 1e-05, %v329_v43 }
 0x10f   : > { %v331_v47 = vadd.f32 1e-05, %v327_v45 }
 0x110   : > { %1716 = vrsqrt.f32 %v333_v46  ;;  %vm370_vm0 = vweird.f32 %v333_v46 }
 0x111   : > { %1718 = vrsqrt.f32 %v331_v47  ;;  %vm350_vm10 = vweird.f32 %v331_v47 }
 0x113   : > { %v322_v48 = vpop.xlane.xlu2 %321 }
 0x114   : > { %v328_v49 = vmul.f32 0.00390625, %v322_v48  ;;  %v316_v50 = vpop.xlane.xlu1 %315 }
 0x115   : > { %v326_v51 = vmul.f32 0.00390625, %v316_v50 }
 0x116   : > { %v1717_v52 = vpop.eup %1716  ;;  %v332_v53 = vadd.f32 1e-05, %v328_v49 }
 0x117   : > { %v365_v54 = vmul.f32 %v1717_v52, %v333_v46  ;;  %v330_v55 = vadd.f32 1e-05, %v326_v51  ;;  %v1719_v56 = vpop.eup %1718  ;;  %vm371_vm1 = vweird.f32 %v1717_v52 }
 0x118   : > { %1720 = vrsqrt.f32 %v332_v53  ;;  %v345_v59 = vmul.f32 %v1719_v56, %v331_v47  ;;  %vm372_vm2 = vmor %vm370_vm0, %vm371_vm1  ;;  %vm360_vm3 = vweird.f32 %v332_v53  ;;  %vm351_vm9 = vweird.f32 %v1719_v56 }
 0x119   : > { %v366_v57 = vmul.f32 %v1717_v52, %v365_v54  ;;  %1722 = vrsqrt.f32 %v330_v55  ;;  %vm340_vm7 = vweird.f32 %v330_v55  ;;  %vm352_vm11 = vmor %vm350_vm10, %vm351_vm9 }
 0x11a   : > { %v346_v63 = vmul.f32 %v1719_v56, %v345_v59 }
 0x11b   : > { %v367_v58 = vmul.f32 0.5, %v366_v57 }
 0x11c   : > { %v347_v8 = vmul.f32 0.5, %v346_v63 }
 0x11d   : > { %v368_v60 = vsub.f32 1.5, %v367_v58 }
 0x11e   : > { %v1721_v61 = vpop.eup %1720  ;;  %v348_v13 = vsub.f32 1.5, %v347_v8 }
 0x11f   : > { %v1723_v62 = vpop.eup %1722  ;;  %v355_v0 = vmul.f32 %v1721_v61, %v332_v53  ;;  %v369_v2 = vmul.f32 %v1717_v52, %v368_v60  ;;  %vm361_vm4 = vweird.f32 %v1721_v61 }
 0x120   : > { %v335_v3 = vmul.f32 %v1723_v62, %v330_v55  ;;  %vm341_vm5 = vweird.f32 %v1723_v62  ;;  %vm362_vm6 = vmor %vm360_vm3, %vm361_vm4  ;;  %v349_v27 = vmul.f32 %v1719_v56, %v348_v13 }
 0x121   : > { %v356_v4 = vmul.f32 %v1721_v61, %v355_v0  ;;  %v373_v5 = vsel %vm372_vm2, %v1717_v52, %v369_v2  ;;  %vm342_vm8 = vmor %vm340_vm7, %vm341_vm5 }
 0x122   : > { %v336_v6 = vmul.f32 %v1723_v62, %v335_v3  ;;  %v377_v7 = vmul.f32 %v373_v5, %v269_v1  ;;  %v353_v29 = vsel %vm352_vm11, %v1719_v56, %v349_v27 }
 0x123   : > { %v357_v9 = vmul.f32 0.5, %v356_v4  ;;  %v375_v34 = vmul.f32 %v353_v29, %v267_v28 }
 0x124   : > { %v337_v10 = vmul.f32 0.5, %v336_v6  ;;  %395 = vperm.xlu2 %1713, %v377_v7  }
 0x125   : > { %v358_v11 = vsub.f32 1.5, %v357_v9 }
 0x126   : > { %v338_v12 = vsub.f32 1.5, %v337_v10 }
 0x127   : > { %v359_v15 = vmul.f32 %v1721_v61, %v358_v11 }
 0x128   : > { %v339_v21 = vmul.f32 %v1723_v62, %v338_v12 }
 0x129   : > { %v363_v23 = vsel %vm362_vm6, %v1721_v61, %v359_v15 }
 0x12a   : > { %v376_v24 = vmul.f32 %v363_v23, %v268_v14  ;;  %v343_v25 = vsel %vm342_vm8, %v1723_v62, %v339_v21 }
 0x12b   : > { %v374_v26 = vmul.f32 %v343_v25, %v266_v20 }
 0x12c   : > { %418 = vperm.xlu2 %1713, %v272_v22   ;;  %390 = vperm.xlu0 %1714, %v376_v24   ;;  %v424_v38 = vpop.permute.xlu1 %423 }
 0x12d   : > { %380 = vperm.xlu1 %1715, %v374_v26  }
 0x134   : > { %385 = vperm.xlu2 %1713, %v375_v34  }
 0x135   : > { %408 = vperm.xlu1 %1715, %v270_v35  }
 0x13c   : > { %413 = vperm.xlu2 %1713, %v271_v36  }
 0x17e   : > { %v396_v37 = vpop.permute.xlu2 %395 }
 0x17f   : > { %v404_v39 = vmul.f32 %v396_v37, %v2030_v16  ;;  %v405_v40 = vmul.f32 %v396_v37, %v2032_v17 }
 0x181   : > { %v432_v41 = vadd.f32 %v424_v38, %v404_v39  ;;  %v433_v42 = vadd.f32 %v424_v38, %v405_v40 }
 0x183   : > { %471 = vmatpush.msra.mxu0 %v432_v41  ;;  %512 = vmatpush.msra.mxu1 %v433_v42 }
 0x186   : > { %v419_v43 = vpop.permute.xlu2 %418 }
 0x18e   : > { %v386_v44 = vpop.permute.xlu2 %385 }
 0x18f   : > { %v400_v50 = vmul.f32 %v386_v44, %v2034_v18  ;;  %v401_v51 = vmul.f32 %v386_v44, %v2036_v19  ;;  %v250_v18 = vld [vmem:[%s2654_s1] sm:$0xff]  ;;  %v251_v19 = vld [vmem:[%s2654_s1 + $0x8] sm:$0xff] }
 0x196   : > { %v414_v49 = vpop.permute.xlu2 %413 }
 0x197   : > { %v428_v17 = vadd.f32 %v414_v49, %v400_v50  ;;  %v429_v53 = vadd.f32 %v414_v49, %v401_v51 }
 0x19e   : > { %v391_v45 = vpop.permute.xlu0 %390 }
 0x19f   : > { %v402_v46 = vmul.f32 %v391_v45, %v2046_v30  ;;  %v403_v47 = vmul.f32 %v391_v45, %v2048_v31  ;;  %v381_v48 = vpop.permute.xlu1 %380 }
 0x1a0   : > { %v398_v54 = vmul.f32 %v381_v48, %v2050_v32  ;;  %v399_v30 = vmul.f32 %v381_v48, %v2052_v33  ;;  %v252_v32 = vld [vmem:[%s2654_s1 + $0x10] sm:$0xff]  ;;  %v253_v33 = vld [vmem:[%s2654_s1 + $0x18] sm:$0xff] }
 0x1a1   : > { %v430_v16 = vadd.f32 %v419_v43, %v402_v46  ;;  %v431_v52 = vadd.f32 %v419_v43, %v403_v47 }
 0x1a3   : > { %472 = vmatpush.msra.mxu0 %v430_v16  ;;  %513 = vmatpush.msra.mxu1 %v431_v52 }
 0x1a5   : > { %473 = vmatpush.msra.mxu0 %v428_v17  ;;  %514 = vmatpush.msra.mxu1 %v429_v53 }
 0x1a7   : > { %v409_v55 = vpop.permute.xlu1 %408 }
 0x1a8   : > { %v426_v31 = vadd.f32 %v409_v55, %v398_v54  ;;  %v427_v56 = vadd.f32 %v409_v55, %v399_v30 }
 0x1aa   : > { %573 = vxpose.xlu2.b32.start [1/4] (short) %v427_v56, 128  ;;  %515 = vmatpush.msra.mxu1 %v427_v56 }
 0x1ab   : > { %541 = vxpose.xlu0.b32.start [1/4] (short) %v426_v31, 128  ;;  %474 = vmatpush.msra.mxu0 %v426_v31 }
 0x1ac   : > { %1574 = vmatmul.msk.f32.vlgmr.msra.gmra.mxu0 %vm434_vm12, %v250_v18  ;;  %1582 = vmatmul.msk.f32.vlgmr.msra.gmra.mxu1 %vm434_vm12, %v250_v18 }
 0x1b2   : > { %574 = vxpose.xlu2.b32.cont [2/4] (short) %v429_v53, 128 }
 0x1b3   : > { %542 = vxpose.xlu0.b32.cont [2/4] (short) %v428_v17, 128 }
 0x1b4   : > { %1575 = vmatmul.msk.f32.gmra.mxu0 %vm434_vm12, %v251_v19  ;;  %1583 = vmatmul.msk.f32.gmra.mxu1 %vm434_vm12, %v251_v19 }
 0x1ba   : > { %575 = vxpose.xlu2.b32.cont [3/4] (short) %v431_v52, 128 }
 0x1bb   : > { %543 = vxpose.xlu0.b32.cont [3/4] (short) %v430_v16, 128 }
 0x1bc   : > { %1576 = vmatmul.msk.f32.gmra.mxu0 %vm434_vm12, %v252_v32  ;;  %1584 = vmatmul.msk.f32.gmra.mxu1 %vm434_vm12, %v252_v32 }
 0x1c2   : > { %576 = vxpose.xlu2.b32.end [4/4] (short) %v433_v42, 128 }
 0x1c3   : > { %544 = vxpose.xlu0.b32.end [4/4] (short) %v432_v41, 128 }
 0x1c4   : > { %1577 = vmatmul.msk.f32.gmra.mxu0 %vm434_vm12, %v253_v33  ;;  %1585 = vmatmul.msk.f32.gmra.mxu1 %vm434_vm12, %v253_v33 }
 0x229   : > { %v476_v57 = vpop.f32.mrf.mxu0  ;;  %v517_v58 = vpop.f32.mrf.mxu1 }
 0x231   : > { %v479_v59 = vpop.f32.mrf.mxu0  ;;  %v520_v60 = vpop.f32.mrf.mxu1 }
 0x239   : > { %v482_v61 = vpop.f32.mrf.mxu0  ;;  %v523_v62 = vpop.f32.mrf.mxu1 }
 0x241   : > { %v485_v63 = vpop.f32.mrf.mxu0  ;;  %v526_v0 = vpop.f32.mrf.mxu1 }
 0x242   : > { %713 = vmatpush.msra.mxu2 %v485_v63  ;;  %826 = vmatpush.msra.mxu3 %v526_v0  ;;  %v263_v0 = vld [vmem:[%s2656_s3 + $0x8] sm:$0xff] }
 0x243   : > { %v589_v14 = vpop.trf.xlu2 }
 0x244   : > { %714 = vmatpush.msra.mxu2 %v482_v61  ;;  %827 = vmatpush.msra.mxu3 %v523_v62 }
 0x246   : > { %715 = vmatpush.msra.mxu2 %v479_v59  ;;  %828 = vmatpush.msra.mxu3 %v520_v60 }
 0x248   : > { %716 = vmatpush.msra.mxu2 %v476_v57  ;;  %829 = vmatpush.msra.mxu3 %v517_v58 }
 0x24b   : > { %v590_v20 = vpop.trf.xlu2 }
 0x24f   : > { %v557_v1 = vpop.trf.xlu0 }
 0x250   : > { %1590 = vmatmul.msk.f32.vlgmr.msra.gmra.mxu2 %vm434_vm12, %v557_v1  ;;  %1622 = vmatmul.msk.f32.vlgmr.msra.gmra.mxu3 %vm434_vm12, %v557_v1 }
 0x253   : > { %v591_v22 = vpop.trf.xlu2 }
 0x257   : > { %v558_v2 = vpop.trf.xlu0 }
 0x258   : > { %1591 = vmatmul.msk.f32.gmra.mxu2 %vm434_vm12, %v558_v2  ;;  %1623 = vmatmul.msk.f32.gmra.mxu3 %vm434_vm12, %v558_v2 }
 0x25b   : > { %v592_v24 = vpop.trf.xlu2 }
 0x25f   : > { %v559_v3 = vpop.trf.xlu0 }
 0x260   : > { %1592 = vmatmul.msk.f32.gmra.mxu2 %vm434_vm12, %v559_v3  ;;  %1624 = vmatmul.msk.f32.gmra.mxu3 %vm434_vm12, %v559_v3 }
 0x263   : > { %v593_v27 = vpop.trf.xlu2 }
 0x267   : > { %v560_v4 = vpop.trf.xlu0 }
 0x268   : > { %1593 = vmatmul.msk.f32.gmra.mxu2 %vm434_vm12, %v560_v4  ;;  %1625 = vmatmul.msk.f32.gmra.mxu3 %vm434_vm12, %v560_v4 }
 0x26b   : > { %v594_v34 = vpop.trf.xlu2 }
 0x26f   : > { %v561_v5 = vpop.trf.xlu0 }
 0x270   : > { %1594 = vmatmul.msk.f32.gmra.mxu2 %vm434_vm12, %v561_v5  ;;  %1626 = vmatmul.msk.f32.gmra.mxu3 %vm434_vm12, %v561_v5 }
 0x273   : > { %v595_v37 = vpop.trf.xlu2 }
 0x277   : > { %v562_v6 = vpop.trf.xlu0 }
 0x278   : > { %1595 = vmatmul.msk.f32.gmra.mxu2 %vm434_vm12, %v562_v6  ;;  %1627 = vmatmul.msk.f32.gmra.mxu3 %vm434_vm12, %v562_v6 }
 0x27b   : > { %v596_v42 = vpop.trf.xlu2 }
 0x27f   : > { %v563_v7 = vpop.trf.xlu0 }
 0x280   : > { %1596 = vmatmul.msk.f32.gmra.mxu2 %vm434_vm12, %v563_v7  ;;  %1628 = vmatmul.msk.f32.gmra.mxu3 %vm434_vm12, %v563_v7 }
 0x283   : > { %v597_v45 = vpop.trf.xlu2 }
 0x287   : > { %v564_v8 = vpop.trf.xlu0 }
 0x288   : > { %1597 = vmatmul.msk.f32.gmra.mxu2 %vm434_vm12, %v564_v8  ;;  %1629 = vmatmul.msk.f32.gmra.mxu3 %vm434_vm12, %v564_v8 }
 0x28b   : > { %v598_v48 = vpop.trf.xlu2 }
 0x28f   : > { %v565_v9 = vpop.trf.xlu0 }
 0x290   : > { %1598 = vmatmul.msk.f32.gmra.mxu2 %vm434_vm12, %v565_v9  ;;  %1630 = vmatmul.msk.f32.gmra.mxu3 %vm434_vm12, %v565_v9 }
 0x293   : > { %v599_v51 = vpop.trf.xlu2 }
 0x297   : > { %v566_v10 = vpop.trf.xlu0 }
 0x298   : > { %1599 = vmatmul.msk.f32.gmra.mxu2 %vm434_vm12, %v566_v10  ;;  %1631 = vmatmul.msk.f32.gmra.mxu3 %vm434_vm12, %v566_v10 }
 0x29b   : > { %v600_v54 = vpop.trf.xlu2 }
 0x29f   : > { %v567_v11 = vpop.trf.xlu0 }
 0x2a0   : > { %1600 = vmatmul.msk.f32.gmra.mxu2 %vm434_vm12, %v567_v11  ;;  %1632 = vmatmul.msk.f32.gmra.mxu3 %vm434_vm12, %v567_v11 }
 0x2a3   : > { %v601_v56 = vpop.trf.xlu2 }
 0x2a7   : > { %v568_v12 = vpop.trf.xlu0 }
 0x2a8   : > { %1601 = vmatmul.msk.f32.gmra.mxu2 %vm434_vm12, %v568_v12  ;;  %1633 = vmatmul.msk.f32.gmra.mxu3 %vm434_vm12, %v568_v12 }
 0x2ab   : > { %v602_v33 = vpop.trf.xlu2 }
 0x2af   : > { %v569_v13 = vpop.trf.xlu0 }
 0x2b0   : > { %1602 = vmatmul.msk.f32.gmra.mxu2 %vm434_vm12, %v569_v13  ;;  %1634 = vmatmul.msk.f32.gmra.mxu3 %vm434_vm12, %v569_v13 }
 0x2b3   : > { %v603_v61 = vpop.trf.xlu2 }
 0x2b7   : > { %v570_v15 = vpop.trf.xlu0 }
 0x2b8   : > { %1603 = vmatmul.msk.f32.gmra.mxu2 %vm434_vm12, %v570_v15  ;;  %1635 = vmatmul.msk.f32.gmra.mxu3 %vm434_vm12, %v570_v15 }
 0x2bb   : > { %v604_v5 = vpop.trf.xlu2 }
 0x2bf   : > { %v571_v21 = vpop.trf.xlu0 }
 0x2c0   : > { %1604 = vmatmul.msk.f32.gmra.mxu2 %vm434_vm12, %v571_v21  ;;  %1636 = vmatmul.msk.f32.gmra.mxu3 %vm434_vm12, %v571_v21 }
 0x2c7   : > { %v572_v23 = vpop.trf.xlu0 }
 0x2c8   : > { %1605 = vmatmul.msk.f32.gmra.mxu2 %vm434_vm12, %v572_v23  ;;  %1637 = vmatmul.msk.f32.gmra.mxu3 %vm434_vm12, %v572_v23  ;;  %v264_v23 = vld [vmem:[%s2656_s3 + $0x10] sm:$0xff] }
 0x2d0   : > { %1606 = vmatmul.msk.f32.gmra.mxu2 %vm434_vm12, %v589_v14  ;;  %1638 = vmatmul.msk.f32.gmra.mxu3 %vm434_vm12, %v589_v14 }
 0x2d3   : > { %v2148_v25 = vpop.f32.mrf.mxu2  ;;  %v2150_v26 = vpop.f32.mrf.mxu3 }
 0x2d8   : > { %1607 = vmatmul.msk.f32.gmra.mxu2 %vm434_vm12, %v590_v20  ;;  %1639 = vmatmul.msk.f32.gmra.mxu3 %vm434_vm12, %v590_v20 }
 0x2db   : > { %v2154_v28 = vpop.f32.mrf.mxu2  ;;  %v2156_v29 = vpop.f32.mrf.mxu3 }
 0x2e0   : > { %1608 = vmatmul.msk.f32.gmra.mxu2 %vm434_vm12, %v591_v22  ;;  %1640 = vmatmul.msk.f32.gmra.mxu3 %vm434_vm12, %v591_v22 }
 0x2e3   : > { %v2160_v35 = vpop.f32.mrf.mxu2  ;;  %v2162_v36 = vpop.f32.mrf.mxu3 }
 0x2e8   : > { %1609 = vmatmul.msk.f32.gmra.mxu2 %vm434_vm12, %v592_v24  ;;  %1641 = vmatmul.msk.f32.gmra.mxu3 %vm434_vm12, %v592_v24 }
 0x2eb   : > { %v2166_v38 = vpop.f32.mrf.mxu2  ;;  %v2168_v39 = vpop.f32.mrf.mxu3 }
 0x2ec   : > { %v936_v22 = vmax.f32 %v2166_v38, %v2168_v39 }
 0x2f0   : > { %1610 = vmatmul.msk.f32.gmra.mxu2 %vm434_vm12, %v593_v27  ;;  %1642 = vmatmul.msk.f32.gmra.mxu3 %vm434_vm12, %v593_v27 }
 0x2f3   : > { %v2172_v40 = vpop.f32.mrf.mxu2  ;;  %v2174_v41 = vpop.f32.mrf.mxu3 }
 0x2f4   : > { %v939_v15 = vmax.f32 %v2172_v40, %v2174_v41 }
 0x2f8   : > { %1611 = vmatmul.msk.f32.gmra.mxu2 %vm434_vm12, %v594_v34  ;;  %1643 = vmatmul.msk.f32.gmra.mxu3 %vm434_vm12, %v594_v34  ;;  %v933_v34 = vmax.f32 %v2160_v35, %v2162_v36 }
 0x2fb   : > { %v2178_v43 = vpop.f32.mrf.mxu2  ;;  %v2180_v44 = vpop.f32.mrf.mxu3 }
 0x2fc   : > { %v942_v11 = vmax.f32 %v2178_v43, %v2180_v44 }
 0x300   : > { %1612 = vmatmul.msk.f32.gmra.mxu2 %vm434_vm12, %v595_v37  ;;  %1644 = vmatmul.msk.f32.gmra.mxu3 %vm434_vm12, %v595_v37 }
 0x303   : > { %v2184_v46 = vpop.f32.mrf.mxu2  ;;  %v2186_v47 = vpop.f32.mrf.mxu3 }
 0x304   : > { %v945_v8 = vmax.f32 %v2184_v46, %v2186_v47 }
 0x308   : > { %1613 = vmatmul.msk.f32.gmra.mxu2 %vm434_vm12, %v596_v42  ;;  %1645 = vmatmul.msk.f32.gmra.mxu3 %vm434_vm12, %v596_v42 }
 0x30b   : > { %v2190_v49 = vpop.f32.mrf.mxu2  ;;  %v2192_v50 = vpop.f32.mrf.mxu3 }
 0x30c   : > { %v948_v4 = vmax.f32 %v2190_v49, %v2192_v50 }
 0x310   : > { %1614 = vmatmul.msk.f32.gmra.mxu2 %vm434_vm12, %v597_v45  ;;  %1646 = vmatmul.msk.f32.gmra.mxu3 %vm434_vm12, %v597_v45  ;;  %v930_v45 = vmax.f32 %v2154_v28, %v2156_v29 }
 0x313   : > { %v2196_v16 = vpop.f32.mrf.mxu2  ;;  %v2198_v52 = vpop.f32.mrf.mxu3 }
 0x314   : > { %v951_v1 = vmax.f32 %v2196_v16, %v2198_v52 }
 0x318   : > { %1615 = vmatmul.msk.f32.gmra.mxu2 %vm434_vm12, %v598_v48  ;;  %1647 = vmatmul.msk.f32.gmra.mxu3 %vm434_vm12, %v598_v48 }
 0x31b   : > { %v2202_v17 = vpop.f32.mrf.mxu2  ;;  %v2204_v53 = vpop.f32.mrf.mxu3 }
 0x31c   : > { %v954_v59 = vmax.f32 %v2202_v17, %v2204_v53 }
 0x320   : > { %1616 = vmatmul.msk.f32.gmra.mxu2 %vm434_vm12, %v599_v51  ;;  %1648 = vmatmul.msk.f32.gmra.mxu3 %vm434_vm12, %v599_v51 }
 0x323   : > { %v2208_v30 = vpop.f32.mrf.mxu2  ;;  %v2210_v55 = vpop.f32.mrf.mxu3 }
 0x324   : > { %v957_v31 = vmax.f32 %v2208_v30, %v2210_v55 }
 0x326   : > { %958 = vmax.xlane.f32.xlu2 %v957_v31 }
 0x328   : > { %1617 = vmatmul.msk.f32.gmra.mxu2 %vm434_vm12, %v600_v54  ;;  %1649 = vmatmul.msk.f32.gmra.mxu3 %vm434_vm12, %v600_v54  ;;  %v927_v54 = vmax.f32 %v2148_v25, %v2150_v26 }
 0x32b   : > { %v2216_v18 = vpop.f32.mrf.mxu2  ;;  %v2218_v19 = vpop.f32.mrf.mxu3 }
 0x32c   : > { %v960_v32 = vmax.f32 %v2216_v18, %v2218_v19 }
 0x32e   : > { %961 = vmax.xlane.f32.xlu1 %v960_v32 }
 0x330   : > { %1618 = vmatmul.msk.f32.gmra.mxu2 %vm434_vm12, %v601_v56  ;;  %1650 = vmatmul.msk.f32.gmra.mxu3 %vm434_vm12, %v601_v56 }
 0x333   : > { %v2224_v57 = vpop.f32.mrf.mxu2  ;;  %v2226_v58 = vpop.f32.mrf.mxu3 }
 0x334   : > { %v963_v60 = vmax.f32 %v2224_v57, %v2226_v58 }
 0x336   : > { %955 = vmax.xlane.f32.xlu1 %v954_v59  ;;  %964 = vmax.xlane.f32.xlu0 %v963_v60 }
 0x338   : > { %1619 = vmatmul.msk.f32.gmra.mxu2 %vm434_vm12, %v602_v33  ;;  %1651 = vmatmul.msk.f32.gmra.mxu3 %vm434_vm12, %v602_v33 }
 0x33b   : > { %v2234_v62 = vpop.f32.mrf.mxu2  ;;  %v2236_v63 = vpop.f32.mrf.mxu3 }
 0x33c   : > { %v966_v32 = vmax.f32 %v2234_v62, %v2236_v63 }
 0x33e   : > { %1390 = vperm.xlu2 %1713, %v263_v0   ;;  %952 = vmax.xlane.f32.xlu1 %v951_v1 }
 0x340   : > { %1620 = vmatmul.msk.f32.gmra.mxu2 %vm434_vm12, %v603_v61  ;;  %1652 = vmatmul.msk.f32.gmra.mxu3 %vm434_vm12, %v603_v61 }
 0x343   : > { %v2245_v2 = vpop.f32.mrf.mxu2  ;;  %v2247_v3 = vpop.f32.mrf.mxu3 }
 0x344   : > { %v969_v60 = vmax.f32 %v2245_v2, %v2247_v3 }
 0x346   : > { %949 = vmax.xlane.f32.xlu1 %v948_v4 }
 0x348   : > { %1621 = vmatmul.msk.f32.gmra.mxu2 %vm434_vm12, %v604_v5  ;;  %1653 = vmatmul.msk.f32.gmra.mxu3 %vm434_vm12, %v604_v5 }
 0x34b   : > { %v2253_v6 = vpop.f32.mrf.mxu2  ;;  %v2255_v7 = vpop.f32.mrf.mxu3 }
 0x34c   : > { %v972_v1 = vmax.f32 %v2253_v6, %v2255_v7 }
 0x34e   : > { %946 = vmax.xlane.f32.xlu1 %v945_v8 }
 0x353   : > { %v2259_v9 = vpop.f32.mrf.mxu2  ;;  %v2261_v10 = vpop.f32.mrf.mxu3 }
 0x354   : > { %2687 = vst [vmem:[#allocation5_spill] sm:$0xff] %v2259_v9  ;;  %v975_v12 = vmax.f32 %v2259_v9, %v2261_v10 }
 0x355   : > { %2688 = vst [vmem:[#allocation6_spill] sm:$0xff] %v2261_v10 }
 0x356   : > { %943 = vmax.xlane.f32.xlu1 %v942_v11  ;;  %976 = vmax.xlane.f32.xlu0 %v975_v12 }
 0x35b   : > { %v2267_v13 = vpop.f32.mrf.mxu2  ;;  %v2269_v14 = vpop.f32.mrf.mxu3 }
 0x35e   : > { %940 = vmax.xlane.f32.xlu1 %v939_v15 }
 0x363   : > { %v2273_v20 = vpop.f32.mrf.mxu2  ;;  %v2275_v21 = vpop.f32.mrf.mxu3 }
 0x364   : > { %2689 = vst [vmem:[#allocation7_spill] sm:$0xff] %v2275_v21 }
 0x366   : > { %937 = vmax.xlane.f32.xlu1 %v936_v22 }
 0x36a   : > { %1395 = vperm.xlu0 %1714, %v264_v23  }
 0x36b   : > { %v2282_v24 = vpop.f32.mrf.mxu2  ;;  %v2284_v27 = vpop.f32.mrf.mxu3 }
 0x36c   : > { %2690 = vst [vmem:[#allocation8_spill] sm:$0xff] %v2282_v24 }
 0x36d   : > { %2691 = vst [vmem:[#allocation9_spill] sm:$0xff] %v2284_v27 }
 0x36e   : > { %934 = vmax.xlane.f32.xlu1 %v933_v34 }
 0x373   : > { %v2288_v37 = vpop.f32.mrf.mxu2  ;;  %v2290_v42 = vpop.f32.mrf.mxu3 }
 0x374   : > { %2692 = vst [vmem:[#allocation10_spill] sm:$0xff] %v2288_v37 }
 0x375   : > { %2693 = vst [vmem:[#allocation11_spill] sm:$0xff] %v2290_v42 }
 0x376   : > { %931 = vmax.xlane.f32.xlu1 %v930_v45 }
 0x37b   : > { %v2294_v48 = vpop.f32.mrf.mxu2  ;;  %v2296_v51 = vpop.f32.mrf.mxu3 }
 0x37c   : > { %2694 = vst [vmem:[#allocation12_spill] sm:$0xff] %v2294_v48 }
 0x37d   : > { %2695 = vst [vmem:[#allocation13_spill] sm:$0xff] %v2296_v51 }
 0x37e   : > { %928 = vmax.xlane.f32.xlu1 %v927_v54 }
 0x383   : > { %v2300_v31 = vpop.f32.mrf.mxu2  ;;  %v2302_v56 = vpop.f32.mrf.mxu3 }
 0x384   : > { %2696 = vst [vmem:[#allocation14_spill] sm:$0xff] %v2302_v56 }
 0x386   : > { %967 = vmax.xlane.f32.xlu1 %v966_v32 }
 0x38b   : > { %v2306_v33 = vpop.f32.mrf.mxu2  ;;  %v2308_v59 = vpop.f32.mrf.mxu3 }
 0x38c   : > { %2697 = vst [vmem:[#allocation15_spill] sm:$0xff] %v2306_v33 }
 0x38d   : > { %2698 = vst [vmem:[#allocation16_spill] sm:$0xff] %v2308_v59 }
 0x38e   : > { %970 = vmax.xlane.f32.xlu1 %v969_v60 }
 0x393   : > { %v2312_v61 = vpop.f32.mrf.mxu2  ;;  %v2314_v0 = vpop.f32.mrf.mxu3 }
 0x394   : > { %2699 = vst [vmem:[#allocation17_spill] sm:$0xff] %v2312_v61  ;;  %v999_v4 = vmax.f32 %v2312_v61, %v2314_v0 }
 0x395   : > { %2700 = vst [vmem:[#allocation18_spill] sm:$0xff] %v2314_v0 }
 0x396   : > { %973 = vmax.xlane.f32.xlu1 %v972_v1 }
 0x39b   : > { %v2320_v5 = vpop.f32.mrf.mxu2  ;;  %v2322_v8 = vpop.f32.mrf.mxu3 }
 0x39c   : > { %2701 = vst [vmem:[#allocation19_spill] sm:$0xff] %v2320_v5  ;;  %v1002_v12 = vmax.f32 %v2320_v5, %v2322_v8 }
 0x39d   : > { %2702 = vst [vmem:[#allocation20_spill] sm:$0xff] %v2322_v8 }
 0x39e   : > { %1000 = vmax.xlane.f32.xlu1 %v999_v4 }
 0x3a1   : > { %v2324_v11 = vpop.xlane.xlu1 %961 }
 0x3a3   : > { %v2328_v15 = vpop.f32.mrf.mxu2  ;;  %v2330_v22 = vpop.f32.mrf.mxu3 }
 0x3a4   : > { %2703 = vst [vmem:[#allocation21_spill] sm:$0xff] %v2328_v15  ;;  %v1005_v34 = vmax.f32 %v2328_v15, %v2330_v22 }
 0x3a5   : > { %2704 = vst [vmem:[#allocation22_spill] sm:$0xff] %v2330_v22 }
 0x3a6   : > { %1003 = vmax.xlane.f32.xlu1 %v1002_v12  ;;  %v254_v12 = vld [vmem:[%s2654_s1 + $0x20] sm:$0xff] }
 0x3a7   : > { %1578 = vmatmul.msk.f32.gmra.mxu0 %vm434_vm12, %v254_v12  ;;  %1586 = vmatmul.msk.f32.gmra.mxu1 %vm434_vm12, %v254_v12 }
 0x3a9   : > { %v2332_v23 = vpop.xlane.xlu1 %955 }
 0x3ab   : > { %v2336_v45 = vpop.f32.mrf.mxu2  ;;  %v2338_v54 = vpop.f32.mrf.mxu3 }
 0x3ac   : > { %2705 = vst [vmem:[#allocation23_spill] sm:$0xff] %v2336_v45  ;;  %v1008_v60 = vmax.f32 %v2336_v45, %v2338_v54 }
 0x3ad   : > { %2706 = vst [vmem:[#allocation24_spill] sm:$0xff] %v2338_v54 }
 0x3ae   : > { %1006 = vmax.xlane.f32.xlu1 %v1005_v34 }
 0x3b1   : > { %v2340_v32 = vpop.xlane.xlu1 %952 }
 0x3b3   : > { %v2344_v1 = vpop.f32.mrf.mxu2  ;;  %v2346_v4 = vpop.f32.mrf.mxu3 }
 0x3b4   : > { %2707 = vst [vmem:[#allocation25_spill] sm:$0xff] %v2344_v1  ;;  %v1011_v34 = vmax.f32 %v2344_v1, %v2346_v4 }
 0x3b5   : > { %2708 = vst [vmem:[#allocation26_spill] sm:$0xff] %v2346_v4 }
 0x3b6   : > { %1009 = vmax.xlane.f32.xlu1 %v1008_v60  ;;  %v255_v60 = vld [vmem:[%s2654_s1 + $0x28] sm:$0xff] }
 0x3b7   : > { %1579 = vmatmul.msk.f32.gmra.mxu0 %vm434_vm12, %v255_v60  ;;  %1587 = vmatmul.msk.f32.gmra.mxu1 %vm434_vm12, %v255_v60 }
 0x3b9   : > { %v2353_v10 = vpop.xlane.xlu1 %949 }
 0x3bb   : > { %v2357_v9 = vpop.f32.mrf.mxu2  ;;  %v2359_v0 = vpop.f32.mrf.mxu3 }
 0x3bc   : > { %2709 = vst [vmem:[#allocation27_spill] sm:$0xff] %v2357_v9  ;;  %v1014_v12 = vmax.f32 %v2357_v9, %v2359_v0 }
 0x3bd   : > { %2710 = vst [vmem:[#allocation28_spill] sm:$0xff] %v2359_v0  ;;  %v993_v0 = vmax.f32 %v2300_v31, %v2302_v56 }
 0x3be   : > { %1012 = vmax.xlane.f32.xlu1 %v1011_v34  ;;  %v256_v34 = vld [vmem:[%s2654_s1 + $0x30] sm:$0xff] }
 0x3bf   : > { %1580 = vmatmul.msk.f32.gmra.mxu0 %vm434_vm12, %v256_v34  ;;  %1588 = vmatmul.msk.f32.gmra.mxu1 %vm434_vm12, %v256_v34 }
 0x3c1   : > { %v2366_v61 = vpop.xlane.xlu1 %946 }
 0x3c3   : > { %v2370_v8 = vpop.f32.mrf.mxu2  ;;  %v2372_v5 = vpop.f32.mrf.mxu3 }
 0x3c4   : > { %2711 = vst [vmem:[#allocation29_spill] sm:$0xff] %v2372_v5  ;;  %v1017_v60 = vmax.f32 %v2370_v8, %v2372_v5 }
 0x3c6   : > { %1015 = vmax.xlane.f32.xlu1 %v1014_v12  ;;  %v257_v12 = vld [vmem:[%s2654_s1 + $0x38] sm:$0xff] }
 0x3c7   : > { %1581 = vmatmul.msk.f32.gmra.mxu0 %vm434_vm12, %v257_v12  ;;  %1589 = vmatmul.msk.f32.gmra.mxu1 %vm434_vm12, %v257_v12  ;;  %v990_v12 = vmax.f32 %v2294_v48, %v2296_v51 }
 0x3c9   : > { %v2379_v22 = vpop.xlane.xlu1 %943 }
 0x3cb   : > { %v2383_v15 = vpop.f32.mrf.mxu2  ;;  %v2385_v54 = vpop.f32.mrf.mxu3 }
 0x3cc   : > { %v1020_v34 = vmax.f32 %v2383_v15, %v2385_v54 }
 0x3ce   : > { %1018 = vmax.xlane.f32.xlu1 %v1017_v60  ;;  %v996_v60 = vmax.f32 %v2306_v33, %v2308_v59 }
 0x3d1   : > { %v2392_v45 = vpop.xlane.xlu1 %940 }
 0x3d6   : > { %1021 = vmax.xlane.f32.xlu1 %v1020_v34  ;;  %v987_v34 = vmax.f32 %v2288_v37, %v2290_v42 }
 0x3d9   : > { %v2396_v4 = vpop.xlane.xlu1 %937 }
 0x3de   : > { %997 = vmax.xlane.f32.xlu1 %v996_v60  ;;  %v984_v60 = vmax.f32 %v2282_v24, %v2284_v27  ;;  %v978_v27 = vmax.f32 %v2267_v13, %v2269_v14 }
 0x3e1   : > { %v2400_v1 = vpop.xlane.xlu1 %934 }
 0x3e6   : > { %994 = vmax.xlane.f32.xlu1 %v993_v0  ;;  %v981_v0 = vmax.f32 %v2273_v20, %v2275_v21 }
 0x3e9   : > { %v2404_v9 = vpop.xlane.xlu1 %931 }
 0x3ee   : > { %991 = vmax.xlane.f32.xlu1 %v990_v12 }
 0x3f1   : > { %v2408_v5 = vpop.xlane.xlu1 %928 }
 0x3f6   : > { %988 = vmax.xlane.f32.xlu1 %v987_v34 }
 0x3f9   : > { %v968_v59 = vpop.xlane.xlu1 %967 }
 0x3fa   : > { %v1050_v21 = vsub.f32 %v2236_v63, %v968_v59  ;;  %v959_v63 = vpop.xlane.xlu2 %958 }
 0x3fe   : > { %985 = vmax.xlane.f32.xlu1 %v984_v60  ;;  %v1049_v60 = vsub.f32 %v2234_v62, %v968_v59 }
 0x401   : > { %v971_v33 = vpop.xlane.xlu1 %970 }
 0x402   : > { %v1051_v51 = vsub.f32 %v2245_v2, %v971_v33  ;;  %v1052_v42 = vsub.f32 %v2247_v3, %v971_v33  ;;  %v1139_v3 = vmul.f32 1.442695, %v1049_v60 }
 0x404   : > { %v1143_v24 = vmul.f32 1.442695, %v1051_v51  ;;  %v1145_v2 = vmul.f32 1.442695, %v1052_v42 }
 0x406   : > { %982 = vmax.xlane.f32.xlu1 %v981_v0  ;;  %v965_v0 = vpop.xlane.xlu0 %964 }
 0x409   : > { %v974_v56 = vpop.xlane.xlu1 %973 }
 0x40a   : > { %v1053_v12 = vsub.f32 %v2253_v6, %v974_v56  ;;  %v1054_v48 = vsub.f32 %v2255_v7, %v974_v56  ;;  %v1047_v7 = vsub.f32 %v2224_v57, %v965_v0  ;;  %v1141_v56 = vmul.f32 1.442695, %v1050_v21 }
 0x40b   : > { %v1043_v21 = vsub.f32 %v2208_v30, %v959_v63  ;;  %v1042_v30 = vsub.f32 %v2204_v53, %v2332_v23  ;;  %v262_v53 = vld [vmem:[%s2656_s3] sm:$0xff] }
 0x40c   : > { %v1147_v34 = vmul.f32 1.442695, %v1053_v12  ;;  %v1149_v37 = vmul.f32 1.442695, %v1054_v48  ;;  %v1048_v48 = vsub.f32 %v2226_v58, %v965_v0  ;;  %v1135_v51 = vmul.f32 1.442695, %v1047_v7 }
 0x40e   : > { %1724 = vpow2.f32 %v1147_v34  ;;  %979 = vmax.xlane.f32.xlu1 %v978_v27  ;;  %v1045_v27 = vsub.f32 %v2216_v18, %v2324_v11  ;;  %v1137_v57 = vmul.f32 1.442695, %v1048_v48  ;;  %v1044_v18 = vsub.f32 %v2210_v55, %v959_v63 }
 0x40f   : > { %1726 = vpow2.f32 %v1149_v37  ;;  %v1046_v37 = vsub.f32 %v2218_v19, %v2324_v11  ;;  %v1127_v19 = vmul.f32 1.442695, %v1043_v21  ;;  %v1041_v11 = vsub.f32 %v2202_v17, %v2332_v23 }
 0x410   : > { %1728 = vpow2.f32 %v1143_v24  ;;  %v1131_v59 = vmul.f32 1.442695, %v1045_v27  ;;  %v1129_v0 = vmul.f32 1.442695, %v1044_v18  ;;  %v1039_v48 = vsub.f32 %v2196_v16, %v2340_v32 }
 0x411   : > { %v2424_v6 = vpop.xlane.xlu1 %1000  ;;  %1730 = vpow2.f32 %v1145_v2  ;;  %v1133_v12 = vmul.f32 1.442695, %v1046_v37  ;;  %v1040_v17 = vsub.f32 %v2198_v52, %v2340_v32  ;;  %v1037_v27 = vsub.f32 %v2190_v49, %v2353_v10 }
 0x412   : > { %1732 = vpow2.f32 %v1139_v3  ;;  %v1123_v3 = vmul.f32 1.442695, %v1041_v11  ;;  %v1034_v18 = vsub.f32 %v2180_v44, %v2379_v22 }
 0x413   : > { %1734 = vpow2.f32 %v1141_v56  ;;  %v1125_v56 = vmul.f32 1.442695, %v1042_v30  ;;  %v1121_v16 = vmul.f32 1.442695, %v1040_v17  ;;  %v1115_v37 = vmul.f32 1.442695, %v1037_v27 }
 0x414   : > { %v1725_v33 = vpop.eup %1724  ;;  %1736 = vpow2.f32 %v1135_v51  ;;  %v1038_v51 = vsub.f32 %v2192_v50, %v2353_v10  ;;  %v265_v50 = vld [vmem:[%s2656_s3 + $0x18] sm:$0xff] }
 0x415   : > { %v1727_v62 = vpop.eup %1726  ;;  %1215 = vmatpush.xpose.msrb.mxu0 %v1725_v33  ;;  %1738 = vpow2.f32 %v1137_v57  ;;  %v1035_v57 = vsub.f32 %v2184_v46, %v2366_v61 }
 0x416   : > { %1247 = vmatpush.xpose.msrb.mxu1 %v1727_v62  ;;  %v1729_v24 = vpop.eup %1728  ;;  %1740 = vpow2.f32 %v1131_v59  ;;  %v1119_v62 = vmul.f32 1.442695, %v1039_v48  ;;  %v1117_v49 = vmul.f32 1.442695, %v1038_v51  ;;  %v1033_v59 = vsub.f32 %v2178_v43, %v2379_v22 }
 0x417   : > { %v1731_v42 = vpop.eup %1730  ;;  %1742 = vpow2.f32 %v1133_v12  ;;  %v1111_v21 = vmul.f32 1.442695, %v1035_v57  ;;  %v1109_v43 = vmul.f32 1.442695, %v1034_v18  ;;  %v1029_v22 = vsub.f32 %v2166_v38, %v2396_v4 }
 0x418   : > { %v1733_v34 = vpop.eup %1732  ;;  %1744 = vpow2.f32 %v1127_v19  ;;  %v1032_v19 = vsub.f32 %v2174_v41, %v2392_v45  ;;  %v1028_v38 = vsub.f32 %v2162_v36, %v2400_v1 }
 0x419   : > { %1216 = vmatpush.xpose.msrb.mxu0 %v1729_v24  ;;  %v2432_v58 = vpop.xlane.xlu1 %1003  ;;  %v1735_v60 = vpop.eup %1734  ;;  %1746 = vpow2.f32 %v1129_v0  ;;  %v1036_v24 = vsub.f32 %v2186_v47, %v2366_v61  ;;  %v1099_v41 = vmul.f32 1.442695, %v1029_v22 }
 0x41a   : > { %1248 = vmatpush.xpose.msrb.mxu1 %v1731_v42  ;;  %v1737_v2 = vpop.eup %1736  ;;  %1748 = vpow2.f32 %v1123_v3  ;;  %v1105_v30 = vmul.f32 1.442695, %v1032_v19 }
 0x41b   : > { %v1739_v7 = vpop.eup %1738  ;;  %1750 = vpow2.f32 %v1125_v56  ;;  %v1113_v46 = vmul.f32 1.442695, %v1036_v24 }
 0x41c   : > { %v1741_v33 = vpop.eup %1740  ;;  %1752 = vpow2.f32 %v1119_v62 }
 0x41d   : > { %1217 = vmatpush.xpose.msrb.mxu0 %v1733_v34  ;;  %v1743_v23 = vpop.eup %1742  ;;  %1754 = vpow2.f32 %v1121_v16  ;;  %v1107_v34 = vmul.f32 1.442695, %v1033_v59 }
 0x41e   : > { %1249 = vmatpush.xpose.msrb.mxu1 %v1735_v60  ;;  %v1745_v52 = vpop.eup %1744  ;;  %1756 = vpow2.f32 %v1115_v37  ;;  %v1031_v60 = vsub.f32 %v2172_v40, %v2392_v45  ;;  %v1030_v40 = vsub.f32 %v2168_v39, %v2396_v4  ;;  %v1027_v45 = vsub.f32 %v2160_v35, %v2400_v1 }
 0x41f   : > { %v1747_v32 = vpop.eup %1746  ;;  %1758 = vpow2.f32 %v1117_v49  ;;  %v1025_v4 = vsub.f32 %v2154_v28, %v2404_v9  ;;  %v1026_v35 = vsub.f32 %v2156_v29, %v2404_v9  ;;  %v1023_v1 = vsub.f32 %v2148_v25, %v2408_v5 }
 0x420   : > { %v1749_v42 = vpop.eup %1748  ;;  %1760 = vpow2.f32 %v1111_v21  ;;  %v1103_v44 = vmul.f32 1.442695, %v1031_v60  ;;  %v1101_v48 = vmul.f32 1.442695, %v1030_v40  ;;  %v1095_v39 = vmul.f32 1.442695, %v1027_v45 }
 0x421   : > { %1218 = vmatpush.xpose.msrb.mxu0 %v1737_v2  ;;  %v2440_v55 = vpop.xlane.xlu1 %1006  ;;  %v1751_v10 = vpop.eup %1750  ;;  %1762 = vpow2.f32 %v1113_v46  ;;  %v1091_v36 = vmul.f32 1.442695, %v1025_v4  ;;  %v1093_v27 = vmul.f32 1.442695, %v1026_v35  ;;  %v1024_v28 = vsub.f32 %v2150_v26, %v2408_v5  ;;  %v2712_v5 = vld [vmem:[#allocation29_spill] sm:$0xff]  ;;  %v2713_v46 = vld [vmem:[#allocation27_spill] sm:$0xff] }
 0x422   : > { %1250 = vmatpush.xpose.msrb.mxu1 %v1739_v7  ;;  %v1753_v47 = vpop.eup %1752  ;;  %1764 = vpow2.f32 %v1107_v34  ;;  %v1087_v29 = vmul.f32 1.442695, %v1023_v1  ;;  %v2719_v4 = vld [vmem:[#allocation21_spill] sm:$0xff]  ;;  %v2721_v1 = vld [vmem:[#allocation19_spill] sm:$0xff] }
 0x423   : > { %v1755_v61 = vpop.eup %1754  ;;  %1766 = vpow2.f32 %v1109_v43  ;;  %v1089_v9 = vmul.f32 1.442695, %v1024_v28  ;;  %v2715_v43 = vld [vmem:[#allocation25_spill] sm:$0xff] }
 0x424   : > { %v1757_v11 = vpop.eup %1756  ;;  %1768 = vpow2.f32 %v1103_v44  ;;  %v2494_v24 = vpop.f32.mrf.mxu0 }
 0x425   : > { %1219 = vmatpush.xpose.msrb.mxu0 %v1741_v33  ;;  %v1759_v0 = vpop.eup %1758  ;;  %1770 = vpow2.f32 %v1105_v30  ;;  %v1097_v33 = vmul.f32 1.442695, %v1028_v38  ;;  %v2496_v21 = vpop.f32.mrf.mxu1 }
 0x426   : > { %1251 = vmatpush.xpose.msrb.mxu1 %v1743_v23  ;;  %v1761_v2 = vpop.eup %1760  ;;  %1772 = vpow2.f32 %v1099_v41 }
 0x427   : > { %1385 = vperm.xlu1 %1715, %v262_v53   ;;  %v1763_v7 = vpop.eup %1762  ;;  %1774 = vpow2.f32 %v1101_v48 }
 0x428   : > { %v1765_v56 = vpop.eup %1764  ;;  %1776 = vpow2.f32 %v1095_v39 }
 0x429   : > { %1220 = vmatpush.xpose.msrb.mxu0 %v1745_v52  ;;  %v2453_v63 = vpop.xlane.xlu1 %1009  ;;  %v1767_v17 = vpop.eup %1766  ;;  %1778 = vpow2.f32 %v1097_v33  ;;  %v1075_v33 = vsub.f32 %v2719_v4, %v2440_v55 }
 0x42a   : > { %1252 = vmatpush.xpose.msrb.mxu1 %v1747_v32  ;;  %v1769_v53 = vpop.eup %1768  ;;  %1780 = vpow2.f32 %v1091_v36 }
 0x42b   : > { %v1771_v23 = vpop.eup %1770  ;;  %1782 = vpow2.f32 %v1093_v27  ;;  %v1073_v27 = vsub.f32 %v2721_v1, %v2432_v58  ;;  %v1191_v28 = vmul.f32 1.442695, %v1075_v33  ;;  %v2731_v33 = vld [vmem:[#allocation11_spill] sm:$0xff] }
 0x42c   : > { %v1773_v16 = vpop.eup %1772  ;;  %1784 = vpow2.f32 %v1087_v29 }
 0x42d   : > { %1221 = vmatpush.xpose.msrb.mxu0 %v1749_v42  ;;  %v1775_v51 = vpop.eup %1774  ;;  %1786 = vpow2.f32 %v1089_v9 }
 0x42e   : > { %1253 = vmatpush.xpose.msrb.mxu1 %v1751_v10  ;;  %v1777_v52 = vpop.eup %1776 }
 0x42f   : > { %1400 = vperm.xlu1 %1715, %v265_v50   ;;  %v1779_v32 = vpop.eup %1778 }
 0x430   : > { %v1781_v42 = vpop.eup %1780 }
 0x431   : > { %1222 = vmatpush.xpose.msrb.mxu0 %v1753_v47  ;;  %v2466_v12 = vpop.xlane.xlu1 %1012  ;;  %v1783_v59 = vpop.eup %1782 }
 0x432   : > { %1254 = vmatpush.xpose.msrb.mxu1 %v1755_v61  ;;  %v1785_v61 = vpop.eup %1784  ;;  %v1079_v19 = vsub.f32 %v2715_v43, %v2466_v12 }
 0x433   : > { %v1787_v34 = vpop.eup %1786 }
 0x434   : > { %v1199_v41 = vmul.f32 1.442695, %v1079_v19  ;;  %v2514_v45 = vpop.f32.mrf.mxu1 }
 0x435   : > { %1223 = vmatpush.xpose.msrb.mxu0 %v1757_v11 }
 0x436   : > { %1255 = vmatpush.xpose.msrb.mxu1 %v1759_v0  ;;  %v2716_v0 = vld [vmem:[#allocation26_spill] sm:$0xff] }
 0x437   : > { %v1080_v44 = vsub.f32 %v2716_v0, %v2466_v12  ;;  %v2718_v12 = vld [vmem:[#allocation24_spill] sm:$0xff]  ;;  %v2727_v0 = vld [vmem:[#allocation14_spill] sm:$0xff] }
 0x438   : > { %v1078_v48 = vsub.f32 %v2718_v12, %v2453_v63 }
 0x439   : > { %1224 = vmatpush.xpose.msrb.mxu0 %v1761_v2  ;;  %v2476_v3 = vpop.xlane.xlu1 %1015  ;;  %v2510_v2 = vpop.f32.mrf.mxu0  ;;  %v1201_v38 = vmul.f32 1.442695, %v1080_v44 }
 0x43a   : > { %1256 = vmatpush.xpose.msrb.mxu1 %v1763_v7  ;;  %v2717_v7 = vld [vmem:[#allocation23_spill] sm:$0xff] }
 0x43d   : > { %1225 = vmatpush.xpose.msrb.mxu0 %v1765_v56 }
 0x43e   : > { %1257 = vmatpush.xpose.msrb.mxu1 %v1767_v17 }
 0x441   : > { %1226 = vmatpush.xpose.msrb.mxu0 %v1769_v53  ;;  %v1019_v62 = vpop.xlane.xlu1 %1018  ;;  %v2720_v53 = vld [vmem:[#allocation22_spill] sm:$0xff] }
 0x442   : > { %1258 = vmatpush.xpose.msrb.mxu1 %v1771_v23  ;;  %v1083_v25 = vsub.f32 %v2370_v8, %v1019_v62  ;;  %v1084_v49 = vsub.f32 %v2712_v5, %v1019_v62  ;;  %v1081_v8 = vsub.f32 %v2713_v46, %v2476_v3  ;;  %v1076_v23 = vsub.f32 %v2720_v53, %v2440_v55  ;;  %v2530_v55 = vpop.f32.mrf.mxu0  ;;  %v2724_v5 = vld [vmem:[#allocation18_spill] sm:$0xff] }
 0x443   : > { %v1197_v62 = vmul.f32 1.442695, %v1078_v48 }
 0x444   : > { %v1207_v18 = vmul.f32 1.442695, %v1083_v25  ;;  %v1209_v47 = vmul.f32 1.442695, %v1084_v49  ;;  %v1203_v11 = vmul.f32 1.442695, %v1081_v8  ;;  %v1072_v49 = vsub.f32 %v2724_v5, %v2424_v6 }
 0x445   : > { %1227 = vmatpush.xpose.msrb.mxu0 %v1773_v16  ;;  %v2722_v16 = vld [vmem:[#allocation20_spill] sm:$0xff]  ;;  %v1193_v29 = vmul.f32 1.442695, %v1076_v23  ;;  %v2723_v25 = vld [vmem:[#allocation17_spill] sm:$0xff]  ;;  %v1929_v23 = vmov 1.0  }
 0x446   : > { %1259 = vmatpush.xpose.msrb.mxu1 %v1775_v51  ;;  %v1074_v51 = vsub.f32 %v2722_v16, %v2432_v58  ;;  %v1185_v8 = vmul.f32 1.442695, %v1072_v49 }
 0x448   : > { %v1189_v58 = vmul.f32 1.442695, %v1074_v51 }
 0x449   : > { %1228 = vmatpush.xpose.msrb.mxu0 %v1777_v52  ;;  %v1022_v37 = vpop.xlane.xlu1 %1021  ;;  %v2532_v52 = vpop.f32.mrf.mxu1 }
 0x44a   : > { %1260 = vmatpush.xpose.msrb.mxu1 %v1779_v32  ;;  %v1085_v57 = vsub.f32 %v2383_v15, %v1022_v37  ;;  %v1086_v26 = vsub.f32 %v2385_v54, %v1022_v37  ;;  %v2714_v15 = vld [vmem:[#allocation28_spill] sm:$0xff] }
 0x44b   : > { %v1082_v54 = vsub.f32 %v2714_v15, %v2476_v3  ;;  %v1077_v3 = vsub.f32 %v2717_v7, %v2453_v63 }
 0x44c   : > { %v1211_v50 = vmul.f32 1.442695, %v1085_v57  ;;  %v1213_v10 = vmul.f32 1.442695, %v1086_v26  ;;  %v1071_v57 = vsub.f32 %v2723_v25, %v2424_v6  ;;  %v1187_v26 = vmul.f32 1.442695, %v1073_v27 }
 0x44d   : > { %1229 = vmatpush.xpose.msrb.mxu0 %v1781_v42  ;;  %v1205_v22 = vmul.f32 1.442695, %v1082_v54  ;;  %v1195_v35 = vmul.f32 1.442695, %v1077_v3  ;;  %v2729_v3 = vld [vmem:[#allocation13_spill] sm:$0xff] }
 0x44e   : > { %1788 = vpow2.f32 %v1211_v50  ;;  %1261 = vmatpush.xpose.msrb.mxu1 %v1783_v59  ;;  %v2725_v59 = vld [vmem:[#allocation15_spill] sm:$0xff] }
 0x44f   : > { %1790 = vpow2.f32 %v1213_v10  ;;  %v1183_v10 = vmul.f32 1.442695, %v1071_v57  ;;  %v2734_v57 = vld [vmem:[#allocation7_spill] sm:$0xff] }
 0x450   : > { %1792 = vpow2.f32 %v1207_v18  ;;  %v2726_v18 = vld [vmem:[#allocation16_spill] sm:$0xff] }
 0x451   : > { %1230 = vmatpush.xpose.msrb.mxu0 %v1785_v61  ;;  %v2502_v60 = vpop.xlane.xlu1 %997  ;;  %1794 = vpow2.f32 %v1209_v47  ;;  %v2544_v61 = vpop.f32.mrf.mxu0 }
 0x452   : > { %1262 = vmatpush.xpose.msrb.mxu1 %v1787_v34  ;;  %1796 = vpow2.f32 %v1203_v11  ;;  %v1069_v46 = vsub.f32 %v2725_v59, %v2502_v60  ;;  %v1070_v6 = vsub.f32 %v2726_v18, %v2502_v60  ;;  %v2548_v19 = vpop.f32.mrf.mxu1 }
 0x453   : > { %1798 = vpow2.f32 %v1205_v22 }
 0x454   : > { %v1789_v30 = vpop.eup %1788  ;;  %1231 = vmatmul.f32.vlgmr.msrb.gmra.mxu0 %v2494_v24  ;;  %1800 = vpow2.f32 %v1199_v41  ;;  %v1179_v34 = vmul.f32 1.442695, %v1069_v46  ;;  %v1181_v11 = vmul.f32 1.442695, %v1070_v6 }
 0x455   : > { %v1791_v40 = vpop.eup %1790  ;;  %1263 = vmatmul.f32.vlgmr.msrb.gmra.mxu1 %v2496_v21  ;;  %1279 = vmatpush.xpose.msra.mxu0 %v1789_v30  ;;  %1802 = vpow2.f32 %v1201_v38 }
 0x456   : > { %1311 = vmatpush.xpose.msra.mxu1 %v1791_v40  ;;  %v1793_v56 = vpop.eup %1792  ;;  %1804 = vpow2.f32 %v1195_v35  ;;  %v2728_v40 = vld [vmem:[#allocation12_spill] sm:$0xff] }
 0x457   : > { %v1795_v17 = vpop.eup %1794  ;;  %1806 = vpow2.f32 %v1197_v62 }
 0x458   : > { %v1797_v36 = vpop.eup %1796  ;;  %1808 = vpow2.f32 %v1191_v28  ;;  %v2733_v28 = vld [vmem:[#allocation9_spill] sm:$0xff] }
 0x459   : > { %1280 = vmatpush.xpose.msra.mxu0 %v1793_v56  ;;  %v2518_v39 = vpop.xlane.xlu1 %994  ;;  %v1799_v63 = vpop.eup %1798  ;;  %1810 = vpow2.f32 %v1193_v29 }
 0x45a   : > { %1312 = vmatpush.xpose.msra.mxu1 %v1795_v17  ;;  %v1801_v9 = vpop.eup %1800  ;;  %1812 = vpow2.f32 %v1187_v26  ;;  %v1067_v43 = vsub.f32 %v2300_v31, %v2518_v39  ;;  %v1068_v44 = vsub.f32 %v2727_v0, %v2518_v39  ;;  %v2730_v17 = vld [vmem:[#allocation10_spill] sm:$0xff] }
 0x45b   : > { %v1803_v32 = vpop.eup %1802  ;;  %1814 = vpow2.f32 %v1189_v58 }
 0x45c   : > { %1234 = vmatmul.f32.gmra.mxu0 %v2510_v2  ;;  %v1805_v42 = vpop.eup %1804  ;;  %1816 = vpow2.f32 %v1183_v10  ;;  %v1175_v30 = vmul.f32 1.442695, %v1067_v43  ;;  %v1177_v31 = vmul.f32 1.442695, %v1068_v44 }
 0x45d   : > { %1266 = vmatmul.f32.gmra.mxu1 %v2514_v45  ;;  %1281 = vmatpush.xpose.msra.mxu0 %v1797_v36  ;;  %v1807_v50 = vpop.eup %1806  ;;  %1818 = vpow2.f32 %v1185_v8  ;;  %v2735_v8 = vld [vmem:[#allocation5_spill] sm:$0xff] }
 0x45e   : > { %1313 = vmatpush.xpose.msra.mxu1 %v1799_v63  ;;  %v1809_v15 = vpop.eup %1808  ;;  %1820 = vpow2.f32 %v1179_v34  ;;  %v2732_v63 = vld [vmem:[#allocation8_spill] sm:$0xff] }
 0x45f   : > { %v1811_v54 = vpop.eup %1810  ;;  %1822 = vpow2.f32 %v1181_v11 }
 0x460   : > { %v1813_v60 = vpop.eup %1812  ;;  %1824 = vpow2.f32 %v1175_v30 }
 0x461   : > { %1282 = vmatpush.xpose.msra.mxu0 %v1801_v9  ;;  %v992_v37 = vpop.xlane.xlu1 %991  ;;  %v1815_v22 = vpop.eup %1814  ;;  %1826 = vpow2.f32 %v1177_v31 }
 0x462   : > { %1314 = vmatpush.xpose.msra.mxu1 %v1803_v32  ;;  %v1065_v7 = vsub.f32 %v2728_v40, %v992_v37  ;;  %v1066_v41 = vsub.f32 %v2729_v3, %v992_v37  ;;  %v1817_v12 = vpop.eup %1816 }
 0x463   : > { %v1819_v48 = vpop.eup %1818 }
 0x464   : > { %1237 = vmatmul.f32.gmra.mxu0 %v2530_v55  ;;  %v1171_v56 = vmul.f32 1.442695, %v1065_v7  ;;  %v1173_v4 = vmul.f32 1.442695, %v1066_v41  ;;  %v1821_v53 = vpop.eup %1820 }
 0x465   : > { %1269 = vmatmul.f32.gmra.mxu1 %v2532_v52  ;;  %1283 = vmatpush.xpose.msra.mxu0 %v1805_v42  ;;  %v1823_v62 = vpop.eup %1822  ;;  %v977_v42 = vpop.xlane.xlu0 %976 }
 0x466   : > { %1315 = vmatpush.xpose.msra.mxu1 %v1807_v50  ;;  %1828 = vpow2.f32 %v1171_v56  ;;  %v1825_v51 = vpop.eup %1824  ;;  %v1055_v18 = vsub.f32 %v2735_v8, %v977_v42 }
 0x467   : > { %1830 = vpow2.f32 %v1173_v4  ;;  %v1827_v29 = vpop.eup %1826 }
 0x468   : > { %v1151_v0 = vmul.f32 1.442695, %v1055_v18 }
 0x469   : > { %1284 = vmatpush.xpose.msra.mxu0 %v1809_v15  ;;  %v989_v47 = vpop.xlane.xlu1 %988  ;;  %v2736_v15 = vld [vmem:[#allocation6_spill] sm:$0xff] }
 0x46a   : > { %1316 = vmatpush.xpose.msra.mxu1 %v1811_v54  ;;  %v1063_v39 = vsub.f32 %v2730_v17, %v989_v47  ;;  %v1064_v35 = vsub.f32 %v2731_v33, %v989_v47  ;;  %v1056_v54 = vsub.f32 %v2736_v15, %v977_v42 }
 0x46c   : > { %1240 = vmatmul.f32.gmra.mxu0 %v2544_v61  ;;  %v1167_v36 = vmul.f32 1.442695, %v1063_v39  ;;  %v1169_v27 = vmul.f32 1.442695, %v1064_v35  ;;  %v1829_v5 = vpop.eup %1828  ;;  %v1153_v44 = vmul.f32 1.442695, %v1056_v54 }
 0x46d   : > { %1272 = vmatmul.f32.gmra.mxu1 %v2548_v19  ;;  %1285 = vmatpush.xpose.msra.mxu0 %v1813_v60  ;;  %v1831_v49 = vpop.eup %1830 }
 0x46e   : > { %1317 = vmatpush.xpose.msra.mxu1 %v1815_v22  ;;  %1832 = vpow2.f32 %v1167_v36 }
 0x46f   : > { %1834 = vpow2.f32 %v1169_v27 }
 0x471   : > { %1286 = vmatpush.xpose.msra.mxu0 %v1817_v12  ;;  %v986_v38 = vpop.xlane.xlu1 %985 }
 0x472   : > { %1318 = vmatpush.xpose.msra.mxu1 %v1819_v48  ;;  %v1061_v1 = vsub.f32 %v2732_v63, %v986_v38  ;;  %v1062_v16 = vsub.f32 %v2733_v28, %v986_v38 }
 0x474   : > { %1243 = vmatmul.f32.gmra.mxu0 %v1929_v23  ;;  %v1163_v32 = vmul.f32 1.442695, %v1061_v1  ;;  %v1165_v25 = vmul.f32 1.442695, %v1062_v16  ;;  %v1833_v10 = vpop.eup %1832 }
 0x475   : > { %1275 = vmatmul.f32.gmra.mxu1 %v1929_v23  ;;  %1287 = vmatpush.xpose.msra.mxu0 %v1821_v53  ;;  %v1835_v59 = vpop.eup %1834 }
 0x476   : > { %1319 = vmatpush.xpose.msra.mxu1 %v1823_v62  ;;  %1836 = vpow2.f32 %v1163_v32  ;;  %v259_v32 = vld [vmem:[%s2655_s2 + $0x8] sm:$0xff] }
 0x477   : > { %1838 = vpow2.f32 %v1165_v25 }
 0x479   : > { %1288 = vmatpush.xpose.msra.mxu0 %v1825_v51  ;;  %v983_v9 = vpop.xlane.xlu1 %982  ;;  %v258_v51 = vld [vmem:[%s2655_s2] sm:$0xff] }
 0x47a   : > { %1320 = vmatpush.xpose.msra.mxu1 %v1827_v29  ;;  %v1059_v37 = vsub.f32 %v2273_v20, %v983_v9  ;;  %v1060_v26 = vsub.f32 %v2734_v57, %v983_v9  ;;  %v260_v57 = vld [vmem:[%s2655_s2 + $0x10] sm:$0xff] }
 0x47c   : > { %v1159_v58 = vmul.f32 1.442695, %v1059_v37  ;;  %v1161_v50 = vmul.f32 1.442695, %v1060_v26  ;;  %v1837_v47 = vpop.eup %1836 }
 0x47d   : > { %1289 = vmatpush.xpose.msra.mxu0 %v1829_v5  ;;  %v1839_v11 = vpop.eup %1838 }
 0x47e   : > { %1321 = vmatpush.xpose.msra.mxu1 %v1831_v49  ;;  %1840 = vpow2.f32 %v1159_v58  ;;  %v261_v49 = vld [vmem:[%s2655_s2 + $0x18] sm:$0xff] }
 0x47f   : > { %1842 = vpow2.f32 %v1161_v50 }
 0x481   : > { %1290 = vmatpush.xpose.msra.mxu0 %v1833_v10  ;;  %v980_v46 = vpop.xlane.xlu1 %979 }
 0x482   : > { %1322 = vmatpush.xpose.msra.mxu1 %v1835_v59  ;;  %v1057_v20 = vsub.f32 %v2267_v13, %v980_v46  ;;  %v1058_v6 = vsub.f32 %v2269_v14, %v980_v46 }
 0x484   : > { %v1155_v34 = vmul.f32 1.442695, %v1057_v20  ;;  %v1157_v43 = vmul.f32 1.442695, %v1058_v6  ;;  %v1841_v60 = vpop.eup %1840 }
 0x485   : > { %1291 = vmatpush.xpose.msra.mxu0 %v1837_v47  ;;  %v1843_v22 = vpop.eup %1842 }
 0x486   : > { %1844 = vpow2.f32 %v1155_v34  ;;  %1323 = vmatpush.xpose.msra.mxu1 %v1839_v11 }
 0x487   : > { %1846 = vpow2.f32 %v1157_v43 }
 0x488   : > { %1848 = vpow2.f32 %v1151_v0 }
 0x489   : > { %1292 = vmatpush.xpose.msra.mxu0 %v1841_v60  ;;  %1850 = vpow2.f32 %v1153_v44 }
 0x48a   : > { %1324 = vmatpush.xpose.msra.mxu1 %v1843_v22 }
 0x48c   : > { %v1845_v13 = vpop.eup %1844 }
 0x48d   : > { %v1847_v14 = vpop.eup %1846  ;;  %1293 = vmatpush.xpose.msra.mxu0 %v1845_v13 }
 0x48e   : > { %1325 = vmatpush.xpose.msra.mxu1 %v1847_v14  ;;  %v1849_v30 = vpop.eup %1848 }
 0x48f   : > { %v1851_v40 = vpop.eup %1850 }
 0x491   : > { %1294 = vmatpush.xpose.msra.mxu0 %v1849_v30 }
 0x492   : > { %1326 = vmatpush.xpose.msra.mxu1 %v1851_v40 }
 0x494   : > { %1295 = vmatmul.f32.vlgmr.msra.gmra.mxu0 %v2494_v24 }
 0x495   : > { %1327 = vmatmul.f32.vlgmr.msra.gmra.mxu1 %v2496_v21 }
 0x49c   : > { %1298 = vmatmul.f32.gmra.mxu0 %v2510_v2 }
 0x49d   : > { %1330 = vmatmul.f32.gmra.mxu1 %v2514_v45 }
 0x4a4   : > { %1301 = vmatmul.f32.gmra.mxu0 %v2530_v55 }
 0x4a5   : > { %1333 = vmatmul.f32.gmra.mxu1 %v2532_v52 }
 0x4ac   : > { %1304 = vmatmul.f32.gmra.mxu0 %v2544_v61 }
 0x4ad   : > { %1336 = vmatmul.f32.gmra.mxu1 %v2548_v19 }
 0x4b4   : > { %1307 = vmatmul.f32.gmra.mxu0 %v1929_v23 }
 0x4b5   : > { %1339 = vmatmul.f32.gmra.mxu1 %v1929_v23 }
 0x4d1   : > { %v1232_v7 = vpop.f32.mrf.mxu0 }
 0x4d2   : > { %v1264_v24 = vpop.f32.mrf.mxu1 }
 0x4d3   : > { %v1265_v27 = vadd.f32 %v1264_v24, %v1232_v7  ;;  %v1386_v7 = vpop.permute.xlu1 %1385 }
 0x4d9   : > { %v1235_v31 = vpop.f32.mrf.mxu0 }
 0x4da   : > { %v1267_v21 = vpop.f32.mrf.mxu1 }
 0x4db   : > { %v1268_v63 = vadd.f32 %v1267_v21, %v1235_v31  ;;  %v1856_v21 = vld [vmem:[%s2020_s13] sm:$0xff] }
 0x4e1   : > { %v1238_v3 = vpop.f32.mrf.mxu0 }
 0x4e2   : > { %v1270_v2 = vpop.f32.mrf.mxu1 }
 0x4e3   : > { %v1271_v62 = vadd.f32 %v1270_v2, %v1238_v3  ;;  %v1391_v2 = vpop.permute.xlu2 %1390 }
 0x4e9   : > { %v1241_v41 = vpop.f32.mrf.mxu0 }
 0x4ea   : > { %v1273_v45 = vpop.f32.mrf.mxu1 }
 0x4eb   : > { %v1274_v53 = vadd.f32 %v1273_v45, %v1241_v41 }
 0x4f1   : > { %v1244_v12 = vpop.f32.mrf.mxu0 }
 0x4f2   : > { %v1276_v55 = vpop.f32.mrf.mxu1 }
 0x4f3   : > { %v1277_v48 = vadd.f32 %v1276_v55, %v1244_v12  ;;  %v1857_v12 = vld [vmem:[%s2020_s13 + $0x10] sm:$0xff] }
 0x4f5   : > { %1852 = vrcp.f32 %v1277_v48  ;;  %v1354_v38 = vand.u32 2147483648, %v1277_v48  ;;  %vm1348_vm13 = vweird.f32 %v1277_v48  ;;  %v1352_v56 = vand.u32 2147483647, %v1277_v48 }
 0x4f7   : > { %v1355_v39 = vor.u32 1.1754944e-38, %v1354_v38  ;;  %vm1353_vm0 = vcmp.eq.f32.partialorder %v1352_v56, 8.507059e+37  ;;  %v1858_v38 = vld [vmem:[%s2020_s13 + $0x20] sm:$0xff]  ;;  %v1401_v56 = vpop.permute.xlu1 %1400 }
 0x4fb   : > { %v1853_v52 = vpop.eup %1852 }
 0x4fc   : > { %v1344_v61 = vmul.f32 %v1853_v52, %v1277_v48  ;;  %vm1349_vm14 = vweird.f32 %v1853_v52  ;;  %v1396_v48 = vpop.permute.xlu0 %1395 }
 0x4fd   : > { %vm1350_vm15 = vmor %vm1348_vm13, %vm1349_vm14 }
 0x4fe   : > { %v1345_v19 = vsub.f32 1.0, %v1344_v61 }
 0x500   : > { %v1346_v17 = vmul.f32 %v1853_v52, %v1345_v19 }
 0x502   : > { %v1347_v4 = vadd.f32 %v1853_v52, %v1346_v17 }
 0x504   : > { %v1351_v33 = vsel %vm1350_vm15, %v1853_v52, %v1347_v4  ;;  %v1859_v4 = vld [vmem:[%s2020_s13 + $0x30] sm:$0xff] }
 0x505   : > { %v1356_v35 = vsel %vm1353_vm0, %v1355_v39, %v1351_v33 }
 0x506   : > { %v1373_v23 = vperm.slane %v1356_v35, 0 }
 0x508   : > { %v1381_v36 = vmul.f32 %v1373_v23, %v1274_v53  ;;  %v1379_v1 = vmul.f32 %v1373_v23, %v1271_v62  ;;  %v1377_v28 = vmul.f32 %v1373_v23, %v1268_v63  ;;  %v1375_v16 = vmul.f32 %v1373_v23, %v1265_v27  ;;  %v1860_v23 = vld [vmem:[%s2020_s13 + $0x8] sm:$0xff] }
 0x50a   : > { %1427 = vmatpush.msrb.mxu0 %v1381_v36 }
 0x50c   : > { %1428 = vmatpush.msrb.mxu0 %v1379_v1  ;;  %v1861_v1 = vld [vmem:[%s2020_s13 + $0x18] sm:$0xff] }
 0x50e   : > { %1429 = vmatpush.msrb.mxu0 %v1377_v28 }
 0x510   : > { %1430 = vmatpush.msrb.mxu0 %v1375_v16 }
 0x511   : > { %1654 = vmatmul.msk.f32.vlgmr.msrb.gmra.mxu0 %vm434_vm12, %v258_v51  ;;  %v1296_v29 = vpop.f32.mrf.mxu0 }
 0x512   : > { %v1328_v9 = vpop.f32.mrf.mxu1 }
 0x513   : > { %v1329_v14 = vadd.f32 %v1328_v9, %v1296_v29 }
 0x519   : > { %1655 = vmatmul.msk.f32.gmra.mxu0 %vm434_vm12, %v259_v32  ;;  %v1299_v37 = vpop.f32.mrf.mxu0 }
 0x51a   : > { %v1331_v25 = vpop.f32.mrf.mxu1 }
 0x51b   : > { %v1332_v22 = vadd.f32 %v1331_v25, %v1299_v37  ;;  %v1863_v37 = vld [vmem:[%s2020_s13 + $0x38] sm:$0xff] }
 0x521   : > { %1656 = vmatmul.msk.f32.gmra.mxu0 %vm434_vm12, %v260_v57  ;;  %v1302_v26 = vpop.f32.mrf.mxu0 }
 0x522   : > { %v1334_v5 = vpop.f32.mrf.mxu1 }
 0x523   : > { %v1335_v44 = vadd.f32 %v1334_v5, %v1302_v26 }
 0x529   : > { %1657 = vmatmul.msk.f32.gmra.mxu0 %vm434_vm12, %v261_v49  ;;  %v1305_v58 = vpop.f32.mrf.mxu0 }
 0x52a   : > { %v1337_v42 = vpop.f32.mrf.mxu1 }
 0x52b   : > { %v1338_v11 = vadd.f32 %v1337_v42, %v1305_v58 }
 0x531   : > { %v1308_v50 = vpop.f32.mrf.mxu0 }
 0x532   : > { %v1340_v10 = vpop.f32.mrf.mxu1 }
 0x533   : > { %v1341_v59 = vadd.f32 %v1340_v10, %v1308_v50 }
 0x535   : > { %1854 = vrcp.f32 %v1341_v59  ;;  %v1369_v20 = vand.u32 2147483648, %v1341_v59  ;;  %v1367_v15 = vand.u32 2147483647, %v1341_v59  ;;  %vm1363_vm2 = vweird.f32 %v1341_v59 }
 0x537   : > { %v1370_v47 = vor.u32 1.1754944e-38, %v1369_v20  ;;  %vm1368_vm4 = vcmp.eq.f32.partialorder %v1367_v15, 8.507059e+37 }
 0x53b   : > { %v1855_v46 = vpop.eup %1854 }
 0x53c   : > { %v1359_v8 = vmul.f32 %v1855_v46, %v1341_v59  ;;  %vm1364_vm1 = vweird.f32 %v1855_v46 }
 0x53d   : > { %vm1365_vm3 = vmor %vm1363_vm2, %vm1364_vm1 }
 0x53e   : > { %v1360_v18 = vsub.f32 1.0, %v1359_v8 }
 0x540   : > { %v1361_v6 = vmul.f32 %v1855_v46, %v1360_v18 }
 0x542   : > { %v1362_v54 = vadd.f32 %v1855_v46, %v1361_v6 }
 0x544   : > { %v1366_v34 = vsel %vm1365_vm3, %v1855_v46, %v1362_v54 }
 0x545   : > { %v1371_v43 = vsel %vm1368_vm4, %v1370_v47, %v1366_v34 }
 0x546   : > { %v1374_v0 = vperm.slane %v1371_v43, 0 }
 0x548   : > { %v1382_v60 = vmul.f32 %v1374_v0, %v1338_v11  ;;  %v1380_v13 = vmul.f32 %v1374_v0, %v1335_v44  ;;  %v1378_v30 = vmul.f32 %v1374_v0, %v1332_v22  ;;  %v1376_v40 = vmul.f32 %v1374_v0, %v1329_v14 }
 0x54a   : > { %1456 = vmatpush.msrb.mxu1 %v1382_v60 }
 0x54c   : > { %1457 = vmatpush.msrb.mxu1 %v1380_v13 }
 0x54e   : > { %1458 = vmatpush.msrb.mxu1 %v1378_v30 }
 0x550   : > { %1459 = vmatpush.msrb.mxu1 %v1376_v40 }
 0x551   : > { %1658 = vmatmul.msk.f32.vlgmr.msrb.gmra.mxu1 %vm434_vm12, %v258_v51  ;;  %v1862_v51 = vld [vmem:[%s2020_s13 + $0x28] sm:$0xff] }
 0x559   : > { %1659 = vmatmul.msk.f32.gmra.mxu1 %vm434_vm12, %v259_v32 }
 0x561   : > { %1660 = vmatmul.msk.f32.gmra.mxu1 %vm434_vm12, %v260_v57 }
 0x569   : > { %1661 = vmatmul.msk.f32.gmra.mxu1 %vm434_vm12, %v261_v49 }
 0x58e   : > { %v1432_v24 = vpop.f32.mrf.mxu0 }
 0x58f   : > { %v1433_v31 = vadd.f32 %v1432_v24, %v1386_v7 }
 0x591   : > { %v1473_v3 = vadd.f32 %v1856_v21, %v1433_v31 }
 0x593   : > { %1481 = vst [vmem:[%s2602_s28] sm:$0xff] %v1473_v3 }
 0x596   : > { %v1435_v41 = vpop.f32.mrf.mxu0 }
 0x597   : > { %v1436_v45 = vadd.f32 %v1435_v41, %v1391_v2 }
 0x599   : > { %v1475_v55 = vadd.f32 %v1857_v12, %v1436_v45 }
 0x59b   : > { %1483 = vst [vmem:[%s2602_s28 + $0x10] sm:$0xff] %v1475_v55 }
 0x59e   : > { %v1438_v52 = vpop.f32.mrf.mxu0 }
 0x59f   : > { %v1439_v61 = vadd.f32 %v1438_v52, %v1396_v48 }
 0x5a1   : > { %v1477_v19 = vadd.f32 %v1858_v38, %v1439_v61 }
 0x5a3   : > { %1485 = vst [vmem:[%s2602_s28 + $0x20] sm:$0xff] %v1477_v19 }
 0x5a6   : > { %v1441_v17 = vpop.f32.mrf.mxu0 }
 0x5a7   : > { %v1442_v39 = vadd.f32 %v1441_v17, %v1401_v56 }
 0x5a9   : > { %v1479_v33 = vadd.f32 %v1859_v4, %v1442_v39 }
 0x5ab   : > { %1487 = vst [vmem:[%s2602_s28 + $0x30] sm:$0xff] %v1479_v33 }
 0x5ce   : > { %v1461_v35 = vpop.f32.mrf.mxu1 }
 0x5cf   : > { %v1462_v53 = vadd.f32 %v1461_v35, %v1386_v7 }
 0x5d1   : > { %v1474_v62 = vadd.f32 %v1860_v23, %v1462_v53 }
 0x5d3   : > { %1482 = vst [vmem:[%s2602_s28 + $0x8] sm:$0xff] %v1474_v62 }
 0x5d6   : > { %v1464_v36 = vpop.f32.mrf.mxu1 }
 0x5d7   : > { %v1465_v63 = vadd.f32 %v1464_v36, %v1391_v2 }
 0x5d9   : > { %v1476_v27 = vadd.f32 %v1861_v1, %v1465_v63 }
 0x5db   : > { %1484 = vst [vmem:[%s2602_s28 + $0x18] sm:$0xff] %v1476_v27 }
 0x5de   : > { %v1467_v28 = vpop.f32.mrf.mxu1 }
 0x5df   : > { %v1468_v16 = vadd.f32 %v1467_v28, %v1396_v48 }
 0x5e1   : > { %v1478_v29 = vadd.f32 %v1862_v51, %v1468_v16 }
 0x5e3   : > { %1486 = vst [vmem:[%s2602_s28 + $0x28] sm:$0xff] %v1478_v29 }
 0x5e6   : > { %v1470_v9 = vpop.f32.mrf.mxu1 }
 0x5e7   : > { %v1471_v32 = vadd.f32 %v1470_v9, %v1401_v56 }
 0x5e9   : > { %v1480_v25 = vadd.f32 %v1863_v37, %v1471_v32 }
 0x5eb   : > { %1488 = vst [vmem:[%s2602_s28 + $0x38] sm:$0xff] %v1480_v25 }
 0x5ec   : > { %1891 = shalt.err (!%p1888_p3)
}
 0x5ed   : > { %s1930_s13 = smov 256   ;;  %s1931_s20 = smov 16  }
 0x5ee   : > { %1669 = dma.vmem_to_hbm [thread:$0]  (%p2005_p5), %s1503_s12, 1024, %s1505_s14, %s1490_s15, %s1930_s13, %s1930_s13, %s1931_s20  }
 0x5ef PF: > { %p1675_p4 = scmp.ge.s32.totalorder %s1926_s24, 2  ;;  %s1519_s28 = sand.u32 1, %s1914_s21  }
 0x5f0   : > { %s1520_s9 = scalar_lea.sflag [#allocation3], %s1519_s28 }
 0x5f1   : > { %p1672_p7 = pnand %p1675_p4, %p2009_p6 }
 0x5f3   : > { %p1673_p8 = pneg %p1672_p7 }
 0x5f5   : > { %1909 = dma.done.wait (%p1673_p8), %s1520_s9, 1024  }
 0x5f6   : > { %1911 = vsyncadd (%p1673_p8), %s1520_s9, 4294966272  ;;  %p16_p9 = scmp.ge.s32.totalorder %s1992_s27, 4   ;;  %s2737_s21 = smov %s1918_s22 }
 0x5f7   : > { %s2738_s22 = smov %s1922_s23  ;;  %s2739_s23 = smov %s2003_s30 }
 0x5f8   : > { %s2740_s24 = smov %s1992_s27  ;;  %18 = sbr.rel (!%p16_p9) target bundleno = 3 (0x3), region = 79 }
 0x5fd   :  { %1526 = vsyncpa [#allocation3], 1 }
 0x5fe   :  { %1528 = vsyncpa [#allocation3 + $0x1], 1 }

</bundles_post_ra>
